<compile_context>
chip_gen: v7x
topology: tpu7x:2x2x1
jax: 0.10.0
libtpu: 0.0.40
codegen_flags: <defaults>
</compile_context>

<pallas_src>
import jax
import jax.numpy as jnp
from jax.experimental import pallas as pl
from jax.experimental.pallas import tpu as pltpu


def _round_up(n, m):
    return ((n + m - 1) // m) * m


def _vmem_limit_bytes():
    # Leave headroom for double-buffering / internal scratch; generation-aware.
    try:
        cap = pltpu.get_tpu_info().vmem_capacity_bytes
    except Exception:
        cap = 128 << 20
    return int(min(96 << 20, max(32 << 20, (cap * 3) // 4)))


def _ffn_kernel(x_ref, w1_ref, b1_ref, w2_ref, b2_ref, o_ref, acc_ref):
    """Grid = (tokens//tm, d_ff//tf); kf (axis 1) is the streamed d_ff axis."""
    kf = pl.program_id(1)

    # Init accumulator with the fc2 bias, once per row tile (hoisted add).
    @pl.when(kf == 0)
    def _():
        acc_ref[...] = jnp.broadcast_to(
            b2_ref[...].astype(jnp.float32), acc_ref.shape)

    # fc1 partial: (tm, d_model) @ (d_model, tf) -> (tm, tf), f32 on MXU.
    # d_model is NOT tiled, so each h element is complete -> ReLU is exact.
    h = jnp.dot(x_ref[...], w1_ref[...], preferred_element_type=jnp.float32)
    h = jnp.maximum(h + b1_ref[...].astype(jnp.float32), 0.0)

    # fc2 partial accumulate: (tm, tf) @ (tf, d_model) -> (tm, d_model).
    acc_ref[...] += jnp.dot(h.astype(w2_ref.dtype), w2_ref[...],
                            preferred_element_type=jnp.float32)

    @pl.when(kf == pl.num_programs(1) - 1)
    def _():
        o_ref[...] = acc_ref[...].astype(o_ref.dtype)


def position_wise_ffn(x, w1, b1, w2, b2, *, row_tile=256, ff_tile=512,
                      compute_dtype=None):
    """x: (B, S, d_model); w1: (d_model, d_ff); b1: (d_ff,);
       w2: (d_ff, d_model); b2: (d_model,). Returns (B, S, d_model) in x.dtype.

       Weights are passed pre-transposed as (in_features, out_features) so the
       kernel does plain x @ W + b, matching nn.Linear's x @ W.T + b."""
    B, S, d_model = x.shape
    d_ff = w1.shape[1]
    out_dtype = x.dtype
    cdt = compute_dtype if compute_dtype is not None else x.dtype

    tokens = B * S

    # Row tile: keep it 256 (MXU-aligned, bf16 sublane-friendly) for real
    # workloads; for tiny inputs shrink to a single sublane-aligned tile.
    tm = int(row_tile)
    if tokens < tm:
        tm = max(16, _round_up(tokens, 16))
    tokens_padded = _round_up(tokens, tm)

    # d_ff tile: must divide d_ff (fallback to full d_ff for awkward sizes).
    tf = min(int(ff_tile), d_ff)
    if d_ff % tf != 0:
        tf = d_ff

    x2d = x.reshape(tokens, d_model).astype(cdt)
    if tokens_padded != tokens:
        x2d = jnp.pad(x2d, ((0, tokens_padded - tokens), (0, 0)))

    w1c = w1.astype(cdt)
    w2c = w2.astype(cdt)
    b1_2d = b1.reshape(1, d_ff).astype(jnp.float32)
    b2_2d = b2.reshape(1, d_model).astype(jnp.float32)

    grid = (tokens_padded // tm, d_ff // tf)

    out = pl.pallas_call(
        _ffn_kernel,
        out_shape=jax.ShapeDtypeStruct((tokens_padded, d_model), out_dtype),
        grid_spec=pltpu.PrefetchScalarGridSpec(
            num_scalar_prefetch=0,
            grid=grid,
            in_specs=[
                pl.BlockSpec((tm, d_model), lambda i, kf: (i, 0)),    # x rows
                pl.BlockSpec((d_model, tf), lambda i, kf: (0, kf)),   # W1 slice
                pl.BlockSpec((1, tf), lambda i, kf: (0, kf)),         # b1 slice
                pl.BlockSpec((tf, d_model), lambda i, kf: (kf, 0)),   # W2 slice
                pl.BlockSpec((1, d_model), lambda i, kf: (0, 0)),     # b2
            ],
            out_specs=pl.BlockSpec((tm, d_model), lambda i, kf: (i, 0)),
            scratch_shapes=[pltpu.VMEM((tm, d_model), jnp.float32)],
        ),
        compiler_params=pltpu.CompilerParams(
            dimension_semantics=("parallel", "arbitrary"),
            vmem_limit_bytes=_vmem_limit_bytes(),
        ),
    )(x2d, w1c, b1_2d, w2c, b2_2d)

    if tokens_padded != tokens:
        out = out[:tokens]
    return out.reshape(B, S, d_model)


def init_params(key, d_model, d_ff, dtype=jnp.float32):
    """Deterministic synthetic init (Kaiming-uniform-ish like nn.Linear)."""
    k1, k2, k3, k4 = jax.random.split(key, 4)
    lim1 = 1.0 / (d_model ** 0.5)
    lim2 = 1.0 / (d_ff ** 0.5)
    # Stored already transposed: (in_features, out_features)
    w1 = jax.random.uniform(k1, (d_model, d_ff), dtype, -lim1, lim1)
    b1 = jax.random.uniform(k2, (d_ff,), dtype, -lim1, lim1)
    w2 = jax.random.uniform(k3, (d_ff, d_model), dtype, -lim2, lim2)
    b2 = jax.random.uniform(k4, (d_model,), dtype, -lim2, lim2)
    return w1, b1, w2, b2


if __name__ == "__main__":
    # Small shapes consistent with the module's forward: (batch, seq, d_model)
    batch, seq = 2, 8
    d_model, d_ff = 512, 2048

    key = jax.random.PRNGKey(0)
    kx, kp = jax.random.split(key)
    x = jax.random.normal(kx, (batch, seq, d_model), jnp.float32)
    w1, b1, w2, b2 = init_params(kp, d_model, d_ff)

    # Pure-JAX reference: fc2(relu(fc1(x)))
    ref = jnp.maximum(x @ w1 + b1, 0.0) @ w2 + b2

    # f32 compute path (exact match to reference).
    y = jax.block_until_ready(position_wise_ffn(x, w1, b1, w2, b2))
    assert y.shape == (batch, seq, d_model)
    assert jnp.allclose(y, ref, atol=1e-4, rtol=1e-4)

    # bf16 compute path (bf16 MXU rate, f32 accumulation) - looser tolerance.
    y_bf16 = jax.block_until_ready(
        position_wise_ffn(x, w1, b1, w2, b2, compute_dtype=jnp.bfloat16))
    assert y_bf16.shape == (batch, seq, d_model)
    assert jnp.allclose(y_bf16, ref, atol=3e-2, rtol=3e-2)

    print("KERNEL_OK")
</pallas_src>

<mosaic_0001>
module attributes {stable_mosaic.version = 11 : i64} {
  func.func @_ffn_kernel(%arg0: i32, %arg1: i32, %arg2: memref<16x512xf32, #tpu.memory_space<vmem>>, %arg3: memref<512x512xf32, #tpu.memory_space<vmem>>, %arg4: memref<1x512xf32, #tpu.memory_space<vmem>>, %arg5: memref<512x512xf32, #tpu.memory_space<vmem>>, %arg6: memref<1x512xf32, #tpu.memory_space<vmem>>, %arg7: memref<16x512xf32, #tpu.memory_space<vmem>>, %arg8: memref<16x512xf32, #tpu.memory_space<vmem>>) attributes {dimension_semantics = [#tpu.dimension_semantics<parallel>, #tpu.dimension_semantics<arbitrary>], iteration_bounds = array<i64: 1, 4>, scalar_prefetch = 0 : i64, scratch_operands = 1 : i64, tpu.core_type = #tpu.core_type<tc>, window_params = [{transform_indices = @transform_0, window_bounds = array<i64: 16, 512>}, {transform_indices = @transform_1, window_bounds = array<i64: 512, 512>}, {transform_indices = @transform_2, window_bounds = array<i64: 1, 512>}, {transform_indices = @transform_3, window_bounds = array<i64: 512, 512>}, {pipeline_mode = #tpu.pipeline_mode<synchronous>, transform_indices = @transform_4, window_bounds = array<i64: 1, 512>}, {transform_indices = @transform_5, window_bounds = array<i64: 16, 512>}]} {
    %c0_i32 = arith.constant 0 : i32
    %0 = arith.cmpi eq, %arg1, %c0_i32 : i32
    %1 = arith.extui %0 : i1 to i32
    %c0_i32_0 = arith.constant 0 : i32
    %2 = arith.cmpi ne, %1, %c0_i32_0 : i32
    scf.if %2 {
      %c0_15 = arith.constant 0 : index
      %c0_16 = arith.constant 0 : index
      %19 = vector.load %arg6[%c0_15, %c0_16] : memref<1x512xf32, #tpu.memory_space<vmem>>, vector<1x512xf32>
      %20 = vector.shape_cast %19 : vector<1x512xf32> to vector<1x512xf32>
      %21 = vector.broadcast %20 : vector<1x512xf32> to vector<16x512xf32>
      %c0_17 = arith.constant 0 : index
      %c0_18 = arith.constant 0 : index
      %22 = vector.load %arg8[%c0_17, %c0_18] : memref<16x512xf32, #tpu.memory_space<vmem>>, vector<16x512xf32>
      tpu.vector_store %arg8[%c0_17, %c0_18], %21 {strides = array<i32>} : memref<16x512xf32, #tpu.memory_space<vmem>>, vector<16x512xf32>,
    } else {
    }
    %c0 = arith.constant 0 : index
    %c0_1 = arith.constant 0 : index
    %3 = vector.load %arg2[%c0, %c0_1] : memref<16x512xf32, #tpu.memory_space<vmem>>, vector<16x512xf32>
    %c0_2 = arith.constant 0 : index
    %c0_3 = arith.constant 0 : index
    %4 = vector.load %arg3[%c0_2, %c0_3] : memref<512x512xf32, #tpu.memory_space<vmem>>, vector<512x512xf32>
    %cst = arith.constant dense<0.000000e+00> : vector<16x512xf32>
    %5 = tpu.matmul %3, %4, %cst {dimension_numbers = #tpu.dot_dimension_numbers<[1], [0], [0], [1], [0, 0, 1, 1], [], []>} : vector<16x512xf32>, vector<512x512xf32>, vector<16x512xf32> -> vector<16x512xf32>
    %c0_4 = arith.constant 0 : index
    %c0_5 = arith.constant 0 : index
    %6 = vector.load %arg4[%c0_4, %c0_5] : memref<1x512xf32, #tpu.memory_space<vmem>>, vector<1x512xf32>
    %7 = vector.broadcast %6 : vector<1x512xf32> to vector<16x512xf32>
    %8 = arith.addf %5, %7 : vector<16x512xf32>
    %cst_6 = arith.constant 0.000000e+00 : f32
    %9 = vector.broadcast %cst_6 : f32 to vector<16x512xf32>
    %10 = arith.maximumf %8, %9 : vector<16x512xf32>
    %c0_7 = arith.constant 0 : index
    %c0_8 = arith.constant 0 : index
    %11 = vector.load %arg8[%c0_7, %c0_8] : memref<16x512xf32, #tpu.memory_space<vmem>>, vector<16x512xf32>
    %c0_9 = arith.constant 0 : index
    %c0_10 = arith.constant 0 : index
    %12 = vector.load %arg5[%c0_9, %c0_10] : memref<512x512xf32, #tpu.memory_space<vmem>>, vector<512x512xf32>
    %cst_11 = arith.constant dense<0.000000e+00> : vector<16x512xf32>
    %13 = tpu.matmul %10, %12, %cst_11 {dimension_numbers = #tpu.dot_dimension_numbers<[1], [0], [0], [1], [0, 0, 1, 1], [], []>} : vector<16x512xf32>, vector<512x512xf32>, vector<16x512xf32> -> vector<16x512xf32>
    %14 = arith.addf %11, %13 : vector<16x512xf32>
    %c0_12 = arith.constant 0 : index
    %c0_13 = arith.constant 0 : index
    %15 = vector.load %arg8[%c0_12, %c0_13] : memref<16x512xf32, #tpu.memory_space<vmem>>, vector<16x512xf32>
    tpu.vector_store %arg8[%c0_12, %c0_13], %14 {strides = array<i32>} : memref<16x512xf32, #tpu.memory_space<vmem>>, vector<16x512xf32>,
    %c3_i32 = arith.constant 3 : i32
    %16 = arith.cmpi eq, %arg1, %c3_i32 : i32
    %17 = arith.extui %16 : i1 to i32
    %c0_i32_14 = arith.constant 0 : i32
    %18 = arith.cmpi ne, %17, %c0_i32_14 : i32
    scf.if %18 {
      %c0_15 = arith.constant 0 : index
      %c0_16 = arith.constant 0 : index
      %19 = vector.load %arg8[%c0_15, %c0_16] : memref<16x512xf32, #tpu.memory_space<vmem>>, vector<16x512xf32>
      %c0_17 = arith.constant 0 : index
      %c0_18 = arith.constant 0 : index
      %20 = vector.load %arg7[%c0_17, %c0_18] : memref<16x512xf32, #tpu.memory_space<vmem>>, vector<16x512xf32>
      tpu.vector_store %arg7[%c0_17, %c0_18], %19 {strides = array<i32>} : memref<16x512xf32, #tpu.memory_space<vmem>>, vector<16x512xf32>,
    } else {
    }
    return
  }
  func.func @transform_0(%arg0: i32, %arg1: i32) -> (i32, i32) {
    %c0_i32 = arith.constant 0 : i32
    %c0_i32_0 = arith.constant 0 : i32
    return %arg0, %c0_i32 : i32, i32
  }
  func.func @transform_1(%arg0: i32, %arg1: i32) -> (i32, i32) {
    %c0_i32 = arith.constant 0 : i32
    %c0_i32_0 = arith.constant 0 : i32
    return %c0_i32, %arg1 : i32, i32
  }
  func.func @transform_2(%arg0: i32, %arg1: i32) -> (i32, i32) {
    %c0_i32 = arith.constant 0 : i32
    %c0_i32_0 = arith.constant 0 : i32
    return %c0_i32, %arg1 : i32, i32
  }
  func.func @transform_3(%arg0: i32, %arg1: i32) -> (i32, i32) {
    %c0_i32 = arith.constant 0 : i32
    %c0_i32_0 = arith.constant 0 : i32
    return %arg1, %c0_i32 : i32, i32
  }
  func.func @transform_4(%arg0: i32, %arg1: i32) -> (i32, i32) {
    %c0_i32 = arith.constant 0 : i32
    %c0_i32_0 = arith.constant 0 : i32
    %c0_i32_1 = arith.constant 0 : i32
    return %c0_i32, %c0_i32_0 : i32, i32
  }
  func.func @transform_5(%arg0: i32, %arg1: i32) -> (i32, i32) {
    %c0_i32 = arith.constant 0 : i32
    %c0_i32_0 = arith.constant 0 : i32
    return %arg0, %c0_i32 : i32, i32
  }
}

</mosaic_0001>

<bundles_post_ra>
// kernel: tpu_custom_call.1
= control target key start
LH: loop header
LB: loop body
LE: loop exit
PB: predicated region body
PF: predicated region fallthrough
CT: control target
= control target key end

     0   :  { %s3534_s0 = inlined_call_operand.hbm [shape: f32[16,512], index: 0, kind: input, shape index: {}]   ;;  %s3535_s1 = inlined_call_operand.hbm [shape: f32[512,2048], index: 1, kind: input, shape index: {}]   ;;  %s3536_s2 = inlined_call_operand.hbm [shape: f32[1,2048], index: 2, kind: input, shape index: {}]   ;;  %s3537_s3 = inlined_call_operand.hbm [shape: f32[2048,512], index: 3, kind: input, shape index: {}]   ;;  %s3538_s4 = inlined_call_operand.hbm [shape: f32[1,512], index: 4, kind: input, shape index: {}]   ;;  %s3539_s5 = inlined_call_operand.hbm [shape: f32[16,512], index: 5, kind: output, shape index: {}]  }
   0x1   :  { %3554 = sst [smem:[#allocation21_spill]] %s3535_s1 }
   0x2   :  { %3555 = sst [smem:[#allocation22_spill]] %s3538_s4 }
   0x3   :  { %3556 = sst [smem:[#allocation23_spill]] %s3539_s5 }
   0x4   :  { %10 = vsyncpa [#allocation4], 0 }
   0x5   :  { %11 = vsyncpa [#allocation7], 0 }
   0x6   :  { %13 = vsyncpa [#allocation7 + $0x1], 0 }
   0x7   :  { %14 = vsyncpa [#allocation10], 0 }
   0x8   :  { %16 = vsyncpa [#allocation10 + $0x1], 0 }
   0x9   :  { %17 = vsyncpa [#allocation5], 0  ;;  %s2695_s18 = smov 0   ;;  %s2697_s19 = smov 0  }
   0xa   :  { %s2699_s20 = smov 0   ;;  %s2701_s21 = smov 0  }
   0xb   :  { %s2703_s22 = smov 0   ;;  %s2705_s23 = smov 0  }
   0xc LB: > { %3557 = sst [smem:[#allocation18_spill]] %s2644_s21  ;;  %s2724_s24 = sadd.s32 4294967295, %s2652_s23   ;;  %s2652_s23 = sphi %s2705_s23, %s23_s23   ;;  %s2648_s22 = sphi %s2703_s22, %s3590_s22   ;;  %s2644_s21 = sphi %s2701_s21, %s3589_s21   ;;  %s2640_s20 = sphi %s2699_s20, %s3588_s20   ;;  %s2636_s19 = sphi %s2697_s19, %s3587_s19   ;;  %s2632_s18 = sphi %s2695_s18, %s3586_s18  }
   0xd   : > { %s68_s25 = sadd.s32 1, %s2640_s20  ;;  %p75_p0 = scmp.ne.s32.totalorder %s2640_s20, %s2636_s19 }
   0xe   : > { %p76_p1 = scmp.eq.s32.totalorder %s2652_s23, 0  ;;  %p81_p2 = scmp.ne.s32.totalorder %s2636_s19, %s2632_s18 }
   0xf   : > { %p3540_p3 = scmp.eq.s32.totalorder %s2724_s24, 0  ;;  %p1750_p5 = scmp.ge.s32.totalorder %s2652_s23, 1 }
  0x10   : > { %p77_p4 = por %p76_p1, %p75_p0  ;;  %p191_p7 = scmp.lt.s32.totalorder %s2652_s23, 5 }
  0x11   : > { %p2735_p6 = por %p3540_p3, %p81_p2  ;;  %s2654_s28 = smov [#allocation11]  }
  0x12   : > { %p2740_p8 = pnand %p1750_p5, %p191_p7  ;;  %s221_s29 = sshll.u32 %s2654_s28, 4  ;;  %s222_s29 = int_to_ptr.vmem [resolvable:$true] %s221_s29 }
  0x13   : > { %s3558_s26 = scalar_select %p2735_p6, 1, 0 }
  0x14   : > { %s3559_s27 = scalar_select %p2740_p8, 1, 0 }
  0x15   : > { %p2334_p9 = pneg %p2740_p8  ;;  %p2353_p10 = scmp.lt.s32.totalorder %s2652_s23, 4 }
  0x16   : > { %s3562_s4 = sld [smem:[#allocation22_spill]] }
  0x17   : > { %p2749_p11 = pnand %p2334_p9, %p3540_p3  ;;  %p2753_p12 = pnand %p2353_p10, %p77_p4 }
  0x19   : > { %s3560_s30 = scalar_select %p2749_p11, 1, 0 }
  0x1a   : > { %s3561_s6 = scalar_select %p2753_p12, 1, 0 }
  0x1b   : > { %p3545_p0 = pneg %p2749_p11 }
  0x1c   : > { %s2414_s9 = scalar_lea.hbm %s3562_s4, 64 }
  0x1d   : > { %p2415_p13 = scmp.ne.s32.totalorder %s3562_s4, %s2414_s9  ;;  %p2421_p4 = scmp.lt.u32.totalorder %s2414_s9, %s3562_s4 }
  0x1f   : > { %p2417_p1 = pnand %p3545_p0, %p2415_p13 }
  0x21   : > { %p2418_p2 = pneg %p2417_p1 }
  0x23   : > { %p2423_p5 = pnand %p2421_p4, %p2418_p2 }
  0x25   : > { %2426 = shalt.err (!%p2423_p5)
}
  0x26   : > { %s2427_s14 = scalar_lea.vmem %s222_s29, 64  ;;  %p2435_p3 = scmp.lt.s32.totalorder %s222_s29, %s222_s29 }
  0x27   : > { %p2428_p7 = scmp.ne.s32.totalorder %s222_s29, %s2427_s14  ;;  %p2436_p6 = scmp.lt.s32.totalorder %s2427_s14, %s2427_s14 }
  0x29   : > { %p2430_p9 = pnand %p2428_p7, %p3545_p0  ;;  %p2437_p8 = por %p2436_p6, %p2435_p3 }
  0x2b   : > { %p2431_p10 = pneg %p2430_p9 }
  0x2d   : > { %p2438_p12 = pnand %p2437_p8, %p2431_p10 }
  0x2f   : > { %2441 = shalt.err (!%p2438_p12)
}
  0x30   : > { %2340 = dma.hbm_to_vmem [thread:$0]  (!%p2749_p11), %s3562_s4, 64, %s222_s29, [#allocation10]  }
  0x31   : > { %s32_s17 = sadd.s32 1, %s2648_s22  ;;  %s3544_s18 = sand.u32 1, %s2652_s23  }
  0x32   : > { %p33_p3 = scmp.ge.s32.totalorder %s32_s17, 4  ;;  %s3548_s28 = sand.u32 1, %s2640_s20  }
  0x33   : > { %s1776_s7 = sshll.u32 %s2648_s22, 9  ;;  %s2787_s8 = sshll.u32 %s3548_s28, 11 }
  0x34   : > { %s3592_s17 = smov (%p33_p3, %s32_s17), 0  ;;  %s3564_s1 = sld [smem:[#allocation21_spill]] }
  0x35   : > { %3563 = sst [smem:[#allocation19_spill]] %s3592_s17  ;;  %s65_s29 = ssub.s32 %s2648_s22, %s3592_s17 }
  0x36   : > { %p66_p6 = scmp.eq.s32.totalorder %s65_s29, 0  ;;  %s236_s12 = scalar_lea.vmem [#allocation6], %s2787_s8 }
  0x37   : > { %s243_s13 = sshll.u32 %s236_s12, 4  ;;  %s2806_s15 = scalar_lea.sflag [#allocation7], %s3544_s18  ;;  %s2797_s13 = int_to_ptr.vmem [resolvable:$true] %s243_s13 }
  0x38   : > { %s2802_s14 = scalar_select %p66_p6, %s2640_s20, %s68_s25  }
  0x39   : > { %p3566_p12 = scmp.ne.s32.totalorder %s3561_s6, 0 }
  0x3a   : > { %s2792_s11 = scalar_lea.hbm %s3564_s1, %s1776_s7  ;;  %3565 = sst [smem:[#allocation20_spill]] %s2802_s14 }
  0x3b   : > { %s2442_s16 = scalar_lea.hbm %s2792_s11, 32768  ;;  %p2812_p13 = pneg %p3566_p12 }
  0x3c   : > { %p2443_p8 = scmp.ne.s32.totalorder %s2792_s11, %s2442_s16  ;;  %s2447_s29 = scalar_lea.hbm %s3564_s1, 131072 }
  0x3d   : > { %s3567_s7 = scalar_select %p2812_p13, 1, 0 }
  0x3e   : > { %p2445_p1 = pnand %p2812_p13, %p2443_p8  ;;  %p2448_p4 = scmp.lt.u32.totalorder %s2792_s11, %s3564_s1 }
  0x3f   : > { %p2449_p5 = scmp.lt.u32.totalorder %s2447_s29, %s2442_s16  ;;  %p2451_p9 = scmp.lt.u32.totalorder %s2442_s16, %s2792_s11 }
  0x40   : > { %p2446_p2 = pneg %p2445_p1 }
  0x41   : > { %p2450_p7 = por %p2449_p5, %p2448_p4 }
  0x43   : > { %p2452_p10 = por %p2451_p9, %p2450_p7 }
  0x45   : > { %p2453_p3 = pnand %p2452_p10, %p2446_p2 }
  0x47   : > { %2456 = shalt.err (!%p2453_p3)
}
  0x48   : > { %s2457_s18 = scalar_lea.vmem %s2797_s13, 32768  ;;  %s2655_s9 = smov [#allocation6]  }
  0x49   : > { %p2458_p6 = scmp.ne.s32.totalorder %s2797_s13, %s2457_s18  ;;  %s2462_s10 = sshll.u32 %s2655_s9, 4  ;;  %s2463_s10 = int_to_ptr.vmem [resolvable:$false] %s2462_s10 }
  0x4a   : > { %s2464_s25 = scalar_lea.vmem %s2463_s10, 65536  ;;  %p2465_p0 = scmp.lt.s32.totalorder %s2797_s13, %s2463_s10 }
  0x4b   : > { %p2460_p8 = pnand %p2458_p6, %p2812_p13  ;;  %p2466_p11 = scmp.lt.s32.totalorder %s2464_s25, %s2457_s18 }
  0x4d   : > { %p2461_p1 = pneg %p2460_p8  ;;  %p2467_p4 = por %p2466_p11, %p2465_p0 }
  0x4f   : > { %p2468_p5 = pnand %p2467_p4, %p2461_p1 }
  0x51   : > { %2471 = shalt.err (!%p2468_p5)
}
  0x52   : > { %s2656_s16 = smov 2048   ;;  %s2657_s29 = smov 512  }
  0x53   : > { %s2658_s12 = smov 32   ;;  %s2659_s9 = smov [#allocation3]  }
  0x54   : > { %2344 = dma.hbm_to_vmem [thread:$0]  (!%p3566_p12), %s2792_s11, 32768, %s2797_s13, %s2806_s15, %s2656_s16, %s2657_s29, %s2658_s12  }
  0x55   : > { %s207_s28 = sshll.u32 %s2659_s9, 4  ;;  %s3568_s18 = sand.u32 1, %s2640_s20   ;;  %s208_s28 = int_to_ptr.vmem [resolvable:$true] %s207_s28 }
  0x56   : > { %s1757_s10 = sshll.u32 %s3568_s18, 2  ;;  %s2472_s4 = scalar_lea.hbm %s3534_s0, 1024 }
  0x57   : > { %p2473_p11 = scmp.ne.s32.totalorder %s3534_s0, %s2472_s4  ;;  %p3569_p0 = scmp.ne.s32.totalorder %s3560_s30, 0 }
  0x58   : > { %p2479_p10 = scmp.lt.u32.totalorder %s2472_s4, %s3534_s0 }
  0x59   : > { %p3570_p2 = pneg %p3569_p0 }
  0x5b   : > { %p2475_p7 = pnand %p2473_p11, %p3570_p2 }
  0x5d   : > { %p2476_p9 = pneg %p2475_p7 }
  0x5f   : > { %p2481_p3 = pnand %p2479_p10, %p2476_p9 }
  0x61   : > { %2484 = shalt.err (!%p2481_p3)
}
  0x62   : > { %s2485_s11 = scalar_lea.vmem %s208_s28, 1024  ;;  %p3571_p8 = pmov %p3570_p2 }
  0x63   : > { %p2486_p6 = scmp.ne.s32.totalorder %s208_s28, %s2485_s11  ;;  %p2493_p5 = scmp.lt.s32.totalorder %s208_s28, %s208_s28 }
  0x64   : > { %p2494_p12 = scmp.lt.s32.totalorder %s2485_s11, %s2485_s11 }
  0x65   : > { %p2488_p1 = pnand %p2486_p6, %p3571_p8 }
  0x66   : > { %p2495_p13 = por %p2494_p12, %p2493_p5 }
  0x67   : > { %p2489_p4 = pneg %p2488_p1 }
  0x69   : > { %p2496_p2 = pnand %p2495_p13, %p2489_p4 }
  0x6b   : > { %2499 = shalt.err (!%p2496_p2)
}
  0x6c   : > { %2337 = dma.hbm_to_vmem [thread:$0]  (!%p3569_p0), %s3534_s0, 1024, %s208_s28, [#allocation4], %s2657_s29, %s2657_s29, %s2658_s12  }
  0x6d   : > { %s1777_s5 = sshll.u32 %s2648_s22, 6  ;;  %s257_s30 = scalar_lea.vmem [#allocation8], %s1757_s10 }
  0x6e   : > { %s2867_s13 = scalar_lea.hbm %s3536_s2, %s1777_s5  ;;  %s265_s14 = sshll.u32 %s257_s30, 4  ;;  %s266_s14 = int_to_ptr.vmem [resolvable:$true] %s265_s14 }
  0x6f   : > { %s2500_s16 = scalar_lea.hbm %s2867_s13, 64  ;;  %p3572_p13 = scmp.ne.s32.totalorder %s3567_s7, 0 }
  0x70   : > { %p2501_p12 = scmp.ne.s32.totalorder %s2867_s13, %s2500_s16  ;;  %s2505_s18 = scalar_lea.hbm %s3536_s2, 256 }
  0x71   : > { %p2506_p0 = scmp.lt.u32.totalorder %s2867_s13, %s3536_s2  ;;  %p2507_p9 = scmp.lt.u32.totalorder %s2505_s18, %s2500_s16 }
  0x72   : > { %p2503_p11 = pnand %p2501_p12, %p3572_p13  ;;  %p2509_p3 = scmp.lt.u32.totalorder %s2500_s16, %s2867_s13 }
  0x73   : > { %p2508_p10 = por %p2507_p9, %p2506_p0 }
  0x74   : > { %p2504_p7 = pneg %p2503_p11 }
  0x75   : > { %p2510_p6 = por %p2509_p3, %p2508_p10 }
  0x77   : > { %p2511_p8 = pnand %p2510_p6, %p2504_p7 }
  0x79   : > { %2514 = shalt.err (!%p2511_p8)
}
  0x7a   : > { %s2515_s10 = scalar_lea.vmem %s266_s14, 64  ;;  %s2660_s1 = smov [#allocation8]  }
  0x7b   : > { %p2516_p1 = scmp.ne.s32.totalorder %s266_s14, %s2515_s10  ;;  %s2520_s4 = sshll.u32 %s2660_s1, 4  ;;  %s2521_s4 = int_to_ptr.vmem [resolvable:$false] %s2520_s4 }
  0x7c   : > { %s2522_s5 = scalar_lea.vmem %s2521_s4, 128  ;;  %p2523_p2 = scmp.lt.s32.totalorder %s266_s14, %s2521_s4 }
  0x7d   : > { %p2518_p4 = pnand %p2516_p1, %p3572_p13  ;;  %p2524_p12 = scmp.lt.s32.totalorder %s2522_s5, %s2515_s10 }
  0x7f   : > { %p2519_p5 = pneg %p2518_p4  ;;  %p2525_p11 = por %p2524_p12, %p2523_p2 }
  0x81   : > { %p2526_p0 = pnand %p2525_p11, %p2519_p5 }
  0x83   : > { %2529 = shalt.err (!%p2526_p0)
}
  0x84   : > { %p3573_p9 = scmp.ne.s32.totalorder %s3561_s6, 0  ;;  %s1779_s21 = sshll.u32 %s2648_s22, 15 }
  0x85   : > { %s2891_s16 = scalar_lea.hbm %s3537_s3, %s1779_s21  ;;  %s276_s9 = scalar_lea.vmem [#allocation9], %s2787_s8 }
  0x86   : > { %2347 = dma.hbm_to_vmem [thread:$0]  (!%p3573_p9), %s2867_s13, 64, %s266_s14, %s2806_s15  }
  0x87   : > { %s284_s28 = sshll.u32 %s276_s9, 4  ;;  %s3574_s18 = sand.u32 1, %s2652_s23   ;;  %s2894_s28 = int_to_ptr.vmem [resolvable:$true] %s284_s28 }
  0x88   : > { %s2898_s25 = scalar_lea.sflag [#allocation10], %s3574_s18  ;;  %s2530_s11 = scalar_lea.hbm %s2891_s16, 32768 }
  0x89   : > { %p2531_p7 = scmp.ne.s32.totalorder %s2891_s16, %s2530_s11  ;;  %s2535_s14 = scalar_lea.hbm %s3537_s3, 131072 }
  0x8a   : > { %p2536_p6 = scmp.lt.u32.totalorder %s2891_s16, %s3537_s3  ;;  %p2537_p8 = scmp.lt.u32.totalorder %s2535_s14, %s2530_s11 }
  0x8b   : > { %p2533_p10 = pnand %p2531_p7, %p3572_p13  ;;  %p2539_p4 = scmp.lt.u32.totalorder %s2530_s11, %s2891_s16 }
  0x8c   : > { %p2538_p1 = por %p2537_p8, %p2536_p6 }
  0x8d   : > { %p2534_p3 = pneg %p2533_p10 }
  0x8e   : > { %p2540_p5 = por %p2539_p4, %p2538_p1 }
  0x90   : > { %p2541_p2 = pnand %p2540_p5, %p2534_p3 }
  0x92   : > { %2544 = shalt.err (!%p2541_p2)
}
  0x93   : > { %s2545_s8 = scalar_lea.vmem %s2894_s28, 32768  ;;  %s2661_s4 = smov [#allocation9]  }
  0x94   : > { %p2546_p12 = scmp.ne.s32.totalorder %s2894_s28, %s2545_s8  ;;  %s2550_s5 = sshll.u32 %s2661_s4, 4  ;;  %s2551_s5 = int_to_ptr.vmem [resolvable:$false] %s2550_s5 }
  0x95   : > { %s2552_s21 = scalar_lea.vmem %s2551_s5, 65536  ;;  %p2553_p7 = scmp.lt.s32.totalorder %s2894_s28, %s2551_s5 }
  0x96   : > { %p2548_p11 = pnand %p2546_p12, %p3572_p13  ;;  %p2554_p10 = scmp.lt.s32.totalorder %s2552_s21, %s2545_s8 }
  0x98   : > { %p2549_p0 = pneg %p2548_p11  ;;  %p2555_p6 = por %p2554_p10, %p2553_p7 }
  0x9a   : > { %p2556_p8 = pnand %p2555_p6, %p2549_p0 }
  0x9c   : > { %2559 = shalt.err (!%p2556_p8)
}
  0x9d   : > { %2350 = dma.hbm_to_vmem [thread:$0]  (!%p3573_p9), %s2891_s16, 32768, %s2894_s28, %s2898_s25, %s2657_s29, %s2657_s29, %s2658_s12  }
  0x9e   : > { %p3575_p13 = scmp.ne.s32.totalorder %s3559_s27, 0 }
  0x9f   : > { %p3576_p3 = scmp.eq.s32.totalorder (!%p3575_p13), %s2724_s24, 0 }
  0xa0   : > { %296 = sbr.rel (%p3575_p13) target bundleno = 872 (0x368), region = 40 }
  0xa7   : > { %2611 = dma.done.wait (%p3576_p3), [#allocation4], 1024   ;;  %p3577_p1 = pmov %p3576_p3 }
  0xa8   : > { %s302_s6 = sand.u32 1, %s2724_s24   ;;  %s304_s7 = sand.u32 1, %s2636_s19  }
  0xa9   : > { %2613 = vsyncadd (%p3577_p1), [#allocation4], 4294966272  ;;  %s1766_s17 = sshll.u32 %s304_s7, 11  ;;  %s303_s30 = scalar_lea.sflag [#allocation7], %s302_s6 }
  0xaa   : > { %s2933_s9 = scalar_lea.vmem [#allocation6], %s1766_s17  ;;  %p3578_p4 = scmp.ne.s32.totalorder %s3558_s26, 0 }
  0xac   : > { %2615 = dma.done.wait (%p3578_p4), %s303_s30, 32832  }
  0xad   : > { %2617 = vsyncadd (%p3578_p4), %s303_s30, 4294934464  ;;  %s2939_s27 = sshll.u32 %s304_s7, 2  ;;  %s321_s12 = scalar_lea.sflag [#allocation10], %s302_s6 }
  0xae   : > { %s315_s29 = scalar_lea.vmem [#allocation8], %s2939_s27  ;;  %s2942_s16 = scalar_lea.vmem [#allocation9], %s1766_s17 }
  0xaf   : > { %2619 = dma.done.wait (%p3578_p4), %s321_s12, 32768  }
  0xb0   : > { %2621 = vsyncadd (%p3578_p4), %s321_s12, 4294934528  ;;  %p3579_p9 = pmov %p3577_p1 }
  0xb1   : > { %p3580_p5 = pmov %p3577_p1 }
  0xb2   : > { %2623 = dma.done.wait (%p3579_p9), [#allocation10], 64  }
  0xb3   : > { %2625 = vsyncadd (%p3580_p5), [#allocation10], 4294967232  ;;  %s3581_s28 = sld [smem:[#allocation18_spill]] }
  0xb9   : > { %p1770_p2 = scmp.ne.s32.totalorder %s3581_s28, 0 }
  0xba   : > { %v371_v0 = vlaneseq (!%p1770_p2)  ;;  %v369_v2 = vld [vmem:[#allocation11] sm:$0xf] (!%p1770_p2) }
  0xbb   : > { %368 = sbr.rel (%p1770_p2) target bundleno = 198 (0xc6), region = 64 }
  0xbc   : > { %v372_v1 = vshrl.u32 (!%p1770_p2), %v371_v0, 7 }
  0xbe   : > { %v373_v3 = vsub.s32 (!%p1770_p2), 0, %v372_v1  ;;  %v377_v4 = vsub.s32 (!%p1770_p2), 1, %v372_v1  ;;  %v381_v5 = vsub.s32 (!%p1770_p2), 2, %v372_v1  ;;  %v385_v6 = vsub.s32 (!%p1770_p2), 3, %v372_v1 }
  0xc0   : > { %v374_v7 = vrot.slane (!%p1770_p2), %v369_v2, %v373_v3  ;;  %v378_v8 = vrot.slane (!%p1770_p2), %v369_v2, %v377_v4  ;;  %v382_v9 = vrot.slane (!%p1770_p2), %v369_v2, %v381_v5  ;;  %v386_v10 = vrot.slane (!%p1770_p2), %v369_v2, %v385_v6 }
  0xc2   : > { %391 = vst [vmem:[#allocation2] sm:$0xff] %v374_v7  ;;  %395 = vst [vmem:[#allocation2 + $0x20] sm:$0xff] %v374_v7 }
  0xc3   : > { %392 = vst [vmem:[#allocation2 + $0x8] sm:$0xff] %v378_v8  ;;  %396 = vst [vmem:[#allocation2 + $0x28] sm:$0xff] %v378_v8 }
  0xc4   : > { %393 = vst [vmem:[#allocation2 + $0x10] sm:$0xff] %v382_v9  ;;  %397 = vst [vmem:[#allocation2 + $0x30] sm:$0xff] %v382_v9 }
  0xc5   : > { %394 = vst [vmem:[#allocation2 + $0x18] sm:$0xff] %v386_v10  ;;  %398 = vst [vmem:[#allocation2 + $0x38] sm:$0xff] %v386_v10 }
  0xc6 PF: > { %v408_v11 = vld [vmem:[%s2933_s9 + $0x8] sm:$0xff]  ;;  %v410_v13 = vld [vmem:[%s2933_s9 + $0x18] sm:$0xff]  ;;  %v407_v16 = vld [vmem:[%s2933_s9] sm:$0xff]  ;;  %s3582_s26 = sld [smem:[#allocation18_spill]] }
  0xc7   : > { %v412_v12 = vld [vmem:[%s2933_s9 + $0x28] sm:$0xff]  ;;  %v414_v15 = vld [vmem:[%s2933_s9 + $0x38] sm:$0xff]  ;;  %v411_v17 = vld [vmem:[%s2933_s9 + $0x20] sm:$0xff] }
  0xc8   : > { %v1780_v14 = vpack.c.bf16 %v412_v12, %v408_v11  ;;  %v1908_v18 = vpack.c.bf16 %v414_v15, %v410_v13  ;;  %v1782_v19 = vpack.c.bf16 %v411_v17, %v407_v16  ;;  %v409_v20 = vld [vmem:[%s2933_s9 + $0x10] sm:$0xff]  ;;  %v416_v22 = vld [vmem:[%s2933_s9 + $0x48] sm:$0xff]  ;;  %v418_v25 = vld [vmem:[%s2933_s9 + $0x58] sm:$0xff] }
  0xc9   : > { %v413_v21 = vld [vmem:[%s2933_s9 + $0x30] sm:$0xff]  ;;  %v420_v24 = vld [vmem:[%s2933_s9 + $0x68] sm:$0xff]  ;;  %v422_v26 = vld [vmem:[%s2933_s9 + $0x78] sm:$0xff] }
  0xca   : > { %1781 = vmatprep.subr.bf16.mxu0 %v1780_v14  ;;  %v1910_v23 = vpack.c.bf16 %v413_v21, %v409_v20  ;;  %1909 = vmatprep.subr.bf16.mxu1 %v1908_v18  ;;  %v1784_v27 = vpack.c.bf16 %v420_v24, %v416_v22  ;;  %v1912_v28 = vpack.c.bf16 %v422_v26, %v418_v25  ;;  %v415_v29 = vld [vmem:[%s2933_s9 + $0x40] sm:$0xff]  ;;  %v417_v31 = vld [vmem:[%s2933_s9 + $0x50] sm:$0xff]  ;;  %v424_v34 = vld [vmem:[%s2933_s9 + $0x88] sm:$0xff] }
  0xcb   : > { %1783 = vmatpush1.bf16.msra.mxu0 %v1782_v19  ;;  %v419_v30 = vld [vmem:[%s2933_s9 + $0x60] sm:$0xff]  ;;  %v421_v33 = vld [vmem:[%s2933_s9 + $0x70] sm:$0xff]  ;;  %v428_v35 = vld [vmem:[%s2933_s9 + $0xa8] sm:$0xff] }
  0xcc   : > { %1911 = vmatpush1.bf16.msra.mxu1 %v1910_v23  ;;  %v1786_v32 = vpack.c.bf16 %v419_v30, %v415_v29  ;;  %1785 = vmatprep.subr.bf16.mxu0 %v1784_v27  ;;  %v1914_v36 = vpack.c.bf16 %v421_v33, %v417_v31  ;;  %v1788_v37 = vpack.c.bf16 %v428_v35, %v424_v34  ;;  %v426_v38 = vld [vmem:[%s2933_s9 + $0x98] sm:$0xff]  ;;  %v423_v40 = vld [vmem:[%s2933_s9 + $0x80] sm:$0xff]  ;;  %v425_v43 = vld [vmem:[%s2933_s9 + $0x90] sm:$0xff]  ;;  %p1771_p12 = scmp.ne.s32.totalorder %s3582_s26, 3 }
  0xcd   : > { %1913 = vmatprep.subr.bf16.mxu1 %v1912_v28  ;;  %v430_v39 = vld [vmem:[%s2933_s9 + $0xb8] sm:$0xff]  ;;  %v427_v42 = vld [vmem:[%s2933_s9 + $0xa0] sm:$0xff]  ;;  %v429_v44 = vld [vmem:[%s2933_s9 + $0xb0] sm:$0xff] }
  0xce   : > { %v1916_v41 = vpack.c.bf16 %v430_v39, %v426_v38  ;;  %v1790_v45 = vpack.c.bf16 %v427_v42, %v423_v40  ;;  %v432_v46 = vld [vmem:[%s2933_s9 + $0xc8] sm:$0xff]  ;;  %v434_v48 = vld [vmem:[%s2933_s9 + $0xd8] sm:$0xff]  ;;  %v1918_v49 = vpack.c.bf16 %v429_v44, %v425_v43  ;;  %v431_v52 = vld [vmem:[%s2933_s9 + $0xc0] sm:$0xff] }
  0xcf   : > { %1787 = vmatpush1.bf16.msra.mxu0 %v1786_v32  ;;  %v436_v47 = vld [vmem:[%s2933_s9 + $0xe8] sm:$0xff]  ;;  %v438_v51 = vld [vmem:[%s2933_s9 + $0xf8] sm:$0xff]  ;;  %v435_v53 = vld [vmem:[%s2933_s9 + $0xe0] sm:$0xff] }
  0xd0   : > { %1915 = vmatpush1.bf16.msra.mxu1 %v1914_v36  ;;  %1789 = vmatprep.subr.bf16.mxu0 %v1788_v37  ;;  %v1792_v50 = vpack.c.bf16 %v436_v47, %v432_v46  ;;  %v1920_v54 = vpack.c.bf16 %v438_v51, %v434_v48  ;;  %v433_v55 = vld [vmem:[%s2933_s9 + $0xd0] sm:$0xff]  ;;  %v440_v57 = vld [vmem:[%s2933_s9 + $0x108] sm:$0xff]  ;;  %v442_v59 = vld [vmem:[%s2933_s9 + $0x118] sm:$0xff]  ;;  %v1794_v61 = vpack.c.bf16 %v435_v53, %v431_v52 }
  0xd1   : > { %1917 = vmatprep.subr.bf16.mxu1 %v1916_v41  ;;  %v437_v56 = vld [vmem:[%s2933_s9 + $0xf0] sm:$0xff]  ;;  %v444_v58 = vld [vmem:[%s2933_s9 + $0x128] sm:$0xff]  ;;  %v446_v60 = vld [vmem:[%s2933_s9 + $0x138] sm:$0xff] }
  0xd2   : > { %v1922_v62 = vpack.c.bf16 %v437_v56, %v433_v55  ;;  %v1796_v63 = vpack.c.bf16 %v444_v58, %v440_v57  ;;  %v439_v0 = vld [vmem:[%s2933_s9 + $0x100] sm:$0xff]  ;;  %v441_v2 = vld [vmem:[%s2933_s9 + $0x110] sm:$0xff]  ;;  %v1924_v3 = vpack.c.bf16 %v446_v60, %v442_v59  ;;  %v448_v5 = vld [vmem:[%s2933_s9 + $0x148] sm:$0xff] }
  0xd3   : > { %1791 = vmatpush1.bf16.msra.mxu0 %v1790_v45  ;;  %v443_v1 = vld [vmem:[%s2933_s9 + $0x120] sm:$0xff]  ;;  %v445_v4 = vld [vmem:[%s2933_s9 + $0x130] sm:$0xff]  ;;  %v452_v6 = vld [vmem:[%s2933_s9 + $0x168] sm:$0xff] }
  0xd4   : > { %1919 = vmatpush1.bf16.msra.mxu1 %v1918_v49  ;;  %1793 = vmatprep.subr.bf16.mxu0 %v1792_v50  ;;  %v450_v7 = vld [vmem:[%s2933_s9 + $0x158] sm:$0xff]  ;;  %v1798_v9 = vpack.c.bf16 %v443_v1, %v439_v0  ;;  %v1926_v10 = vpack.c.bf16 %v445_v4, %v441_v2  ;;  %v1800_v11 = vpack.c.bf16 %v452_v6, %v448_v5  ;;  %v447_v12 = vld [vmem:[%s2933_s9 + $0x140] sm:$0xff]  ;;  %v449_v14 = vld [vmem:[%s2933_s9 + $0x150] sm:$0xff] }
  0xd5   : > { %1921 = vmatprep.subr.bf16.mxu1 %v1920_v54  ;;  %v454_v8 = vld [vmem:[%s2933_s9 + $0x178] sm:$0xff]  ;;  %v451_v13 = vld [vmem:[%s2933_s9 + $0x160] sm:$0xff]  ;;  %v453_v16 = vld [vmem:[%s2933_s9 + $0x170] sm:$0xff] }
  0xd6   : > { %v1928_v15 = vpack.c.bf16 %v454_v8, %v450_v7  ;;  %v456_v17 = vld [vmem:[%s2933_s9 + $0x188] sm:$0xff]  ;;  %v458_v19 = vld [vmem:[%s2933_s9 + $0x198] sm:$0xff]  ;;  %v1802_v21 = vpack.c.bf16 %v451_v13, %v447_v12  ;;  %v1930_v22 = vpack.c.bf16 %v453_v16, %v449_v14  ;;  %v455_v24 = vld [vmem:[%s2933_s9 + $0x180] sm:$0xff] }
  0xd7   : > { %1795 = vmatpush1.bf16.msra.mxu0 %v1794_v61  ;;  %v460_v18 = vld [vmem:[%s2933_s9 + $0x1a8] sm:$0xff]  ;;  %v462_v20 = vld [vmem:[%s2933_s9 + $0x1b8] sm:$0xff]  ;;  %v459_v25 = vld [vmem:[%s2933_s9 + $0x1a0] sm:$0xff] }
  0xd8   : > { %1923 = vmatpush1.bf16.msra.mxu1 %v1922_v62  ;;  %1797 = vmatprep.subr.bf16.mxu0 %v1796_v63  ;;  %v1804_v23 = vpack.c.bf16 %v460_v18, %v456_v17  ;;  %v457_v26 = vld [vmem:[%s2933_s9 + $0x190] sm:$0xff]  ;;  %v1932_v27 = vpack.c.bf16 %v462_v20, %v458_v19  ;;  %v464_v29 = vld [vmem:[%s2933_s9 + $0x1c8] sm:$0xff]  ;;  %v466_v31 = vld [vmem:[%s2933_s9 + $0x1d8] sm:$0xff]  ;;  %v1806_v33 = vpack.c.bf16 %v459_v25, %v455_v24 }
  0xd9   : > { %1925 = vmatprep.subr.bf16.mxu1 %v1924_v3  ;;  %v461_v28 = vld [vmem:[%s2933_s9 + $0x1b0] sm:$0xff]  ;;  %v468_v30 = vld [vmem:[%s2933_s9 + $0x1e8] sm:$0xff]  ;;  %v470_v32 = vld [vmem:[%s2933_s9 + $0x1f8] sm:$0xff] }
  0xda   : > { %v1934_v34 = vpack.c.bf16 %v461_v28, %v457_v26  ;;  %v1808_v35 = vpack.c.bf16 %v468_v30, %v464_v29  ;;  %v463_v36 = vld [vmem:[%s2933_s9 + $0x1c0] sm:$0xff]  ;;  %v465_v38 = vld [vmem:[%s2933_s9 + $0x1d0] sm:$0xff]  ;;  %v1936_v39 = vpack.c.bf16 %v470_v32, %v466_v31  ;;  %v472_v41 = vld [vmem:[%s2933_s9 + $0x208] sm:$0xff] }
  0xdb   : > { %1799 = vmatpush1.bf16.msra.mxu0 %v1798_v9  ;;  %v467_v37 = vld [vmem:[%s2933_s9 + $0x1e0] sm:$0xff]  ;;  %v469_v40 = vld [vmem:[%s2933_s9 + $0x1f0] sm:$0xff]  ;;  %v476_v42 = vld [vmem:[%s2933_s9 + $0x228] sm:$0xff] }
  0xdc   : > { %1927 = vmatpush1.bf16.msra.mxu1 %v1926_v10  ;;  %1801 = vmatprep.subr.bf16.mxu0 %v1800_v11  ;;  %v474_v43 = vld [vmem:[%s2933_s9 + $0x218] sm:$0xff]  ;;  %v1810_v45 = vpack.c.bf16 %v467_v37, %v463_v36  ;;  %v1938_v46 = vpack.c.bf16 %v469_v40, %v465_v38  ;;  %v1812_v47 = vpack.c.bf16 %v476_v42, %v472_v41  ;;  %v471_v48 = vld [vmem:[%s2933_s9 + $0x200] sm:$0xff]  ;;  %v473_v50 = vld [vmem:[%s2933_s9 + $0x210] sm:$0xff] }
  0xdd   : > { %1929 = vmatprep.subr.bf16.mxu1 %v1928_v15  ;;  %v478_v44 = vld [vmem:[%s2933_s9 + $0x238] sm:$0xff]  ;;  %v475_v49 = vld [vmem:[%s2933_s9 + $0x220] sm:$0xff]  ;;  %v477_v52 = vld [vmem:[%s2933_s9 + $0x230] sm:$0xff] }
  0xde   : > { %v1940_v51 = vpack.c.bf16 %v478_v44, %v474_v43  ;;  %v480_v53 = vld [vmem:[%s2933_s9 + $0x248] sm:$0xff]  ;;  %v482_v55 = vld [vmem:[%s2933_s9 + $0x258] sm:$0xff]  ;;  %v1814_v57 = vpack.c.bf16 %v475_v49, %v471_v48  ;;  %v1942_v58 = vpack.c.bf16 %v477_v52, %v473_v50  ;;  %v479_v60 = vld [vmem:[%s2933_s9 + $0x240] sm:$0xff] }
  0xdf   : > { %1803 = vmatpush1.bf16.msra.mxu0 %v1802_v21  ;;  %v484_v54 = vld [vmem:[%s2933_s9 + $0x268] sm:$0xff]  ;;  %v486_v56 = vld [vmem:[%s2933_s9 + $0x278] sm:$0xff]  ;;  %v483_v61 = vld [vmem:[%s2933_s9 + $0x260] sm:$0xff] }
  0xe0   : > { %1931 = vmatpush1.bf16.msra.mxu1 %v1930_v22  ;;  %1805 = vmatprep.subr.bf16.mxu0 %v1804_v23  ;;  %v1816_v59 = vpack.c.bf16 %v484_v54, %v480_v53  ;;  %v481_v62 = vld [vmem:[%s2933_s9 + $0x250] sm:$0xff]  ;;  %v1944_v63 = vpack.c.bf16 %v486_v56, %v482_v55  ;;  %v488_v1 = vld [vmem:[%s2933_s9 + $0x288] sm:$0xff]  ;;  %v490_v3 = vld [vmem:[%s2933_s9 + $0x298] sm:$0xff]  ;;  %v1818_v5 = vpack.c.bf16 %v483_v61, %v479_v60 }
  0xe1   : > { %1933 = vmatprep.subr.bf16.mxu1 %v1932_v27  ;;  %v485_v0 = vld [vmem:[%s2933_s9 + $0x270] sm:$0xff]  ;;  %v492_v2 = vld [vmem:[%s2933_s9 + $0x2a8] sm:$0xff]  ;;  %v494_v4 = vld [vmem:[%s2933_s9 + $0x2b8] sm:$0xff] }
  0xe2   : > { %v1946_v6 = vpack.c.bf16 %v485_v0, %v481_v62  ;;  %v1820_v7 = vpack.c.bf16 %v492_v2, %v488_v1  ;;  %v487_v8 = vld [vmem:[%s2933_s9 + $0x280] sm:$0xff]  ;;  %v489_v10 = vld [vmem:[%s2933_s9 + $0x290] sm:$0xff]  ;;  %v1948_v11 = vpack.c.bf16 %v494_v4, %v490_v3  ;;  %v496_v13 = vld [vmem:[%s2933_s9 + $0x2c8] sm:$0xff] }
  0xe3   : > { %1807 = vmatpush1.bf16.msra.mxu0 %v1806_v33  ;;  %v491_v9 = vld [vmem:[%s2933_s9 + $0x2a0] sm:$0xff]  ;;  %v493_v12 = vld [vmem:[%s2933_s9 + $0x2b0] sm:$0xff]  ;;  %v500_v14 = vld [vmem:[%s2933_s9 + $0x2e8] sm:$0xff] }
  0xe4   : > { %1935 = vmatpush1.bf16.msra.mxu1 %v1934_v34  ;;  %1809 = vmatprep.subr.bf16.mxu0 %v1808_v35  ;;  %v498_v15 = vld [vmem:[%s2933_s9 + $0x2d8] sm:$0xff]  ;;  %v1822_v17 = vpack.c.bf16 %v491_v9, %v487_v8  ;;  %v495_v18 = vld [vmem:[%s2933_s9 + $0x2c0] sm:$0xff]  ;;  %v1950_v19 = vpack.c.bf16 %v493_v12, %v489_v10  ;;  %v1824_v20 = vpack.c.bf16 %v500_v14, %v496_v13  ;;  %v497_v22 = vld [vmem:[%s2933_s9 + $0x2d0] sm:$0xff] }
  0xe5   : > { %1937 = vmatprep.subr.bf16.mxu1 %v1936_v39  ;;  %v502_v16 = vld [vmem:[%s2933_s9 + $0x2f8] sm:$0xff]  ;;  %v499_v21 = vld [vmem:[%s2933_s9 + $0x2e0] sm:$0xff]  ;;  %v501_v23 = vld [vmem:[%s2933_s9 + $0x2f0] sm:$0xff] }
  0xe6   : > { %v1952_v24 = vpack.c.bf16 %v502_v16, %v498_v15  ;;  %v504_v25 = vld [vmem:[%s2933_s9 + $0x308] sm:$0xff]  ;;  %v506_v28 = vld [vmem:[%s2933_s9 + $0x318] sm:$0xff]  ;;  %v1826_v30 = vpack.c.bf16 %v499_v21, %v495_v18  ;;  %v1954_v31 = vpack.c.bf16 %v501_v23, %v497_v22  ;;  %v503_v33 = vld [vmem:[%s2933_s9 + $0x300] sm:$0xff] }
  0xe7   : > { %1811 = vmatpush1.bf16.msra.mxu0 %v1810_v45  ;;  %v508_v26 = vld [vmem:[%s2933_s9 + $0x328] sm:$0xff]  ;;  %v510_v29 = vld [vmem:[%s2933_s9 + $0x338] sm:$0xff]  ;;  %v507_v34 = vld [vmem:[%s2933_s9 + $0x320] sm:$0xff] }
  0xe8   : > { %1939 = vmatpush1.bf16.msra.mxu1 %v1938_v46  ;;  %1813 = vmatprep.subr.bf16.mxu0 %v1812_v47  ;;  %v400_v27 = vld [vmem:[#allocation3 + $0x8] sm:$0xff]  ;;  %v1828_v32 = vpack.c.bf16 %v508_v26, %v504_v25  ;;  %v505_v35 = vld [vmem:[%s2933_s9 + $0x310] sm:$0xff]  ;;  %v1956_v36 = vpack.c.bf16 %v510_v29, %v506_v28  ;;  %v514_v40 = vld [vmem:[%s2933_s9 + $0x358] sm:$0xff]  ;;  %v1830_v42 = vpack.c.bf16 %v507_v34, %v503_v33 }
  0xe9   : > { %1941 = vmatprep.subr.bf16.mxu1 %v1940_v51  ;;  %749 = vmatprep.mubr.f32.mxu0 %v400_v27  ;;  %v509_v37 = vld [vmem:[%s2933_s9 + $0x330] sm:$0xff]  ;;  %v512_v38 = vld [vmem:[%s2933_s9 + $0x348] sm:$0xff]  ;;  %v518_v41 = vld [vmem:[%s2933_s9 + $0x378] sm:$0xff] }
  0xea   : > { %903 = vmatprep.mubr.f32.mxu1 %v400_v27  ;;  %v516_v39 = vld [vmem:[%s2933_s9 + $0x368] sm:$0xff]  ;;  %v1958_v43 = vpack.c.bf16 %v509_v37, %v505_v35  ;;  %v511_v45 = vld [vmem:[%s2933_s9 + $0x340] sm:$0xff]  ;;  %v513_v47 = vld [vmem:[%s2933_s9 + $0x350] sm:$0xff]  ;;  %v1960_v48 = vpack.c.bf16 %v518_v41, %v514_v40 }
  0xeb   : > { %1815 = vmatpush1.bf16.msra.mxu0 %v1814_v57  ;;  %v1832_v44 = vpack.c.bf16 %v516_v39, %v512_v38  ;;  %v515_v46 = vld [vmem:[%s2933_s9 + $0x360] sm:$0xff]  ;;  %v517_v49 = vld [vmem:[%s2933_s9 + $0x370] sm:$0xff]  ;;  %v520_v50 = vld [vmem:[%s2933_s9 + $0x388] sm:$0xff] }
  0xec   : > { %1943 = vmatpush1.bf16.msra.mxu1 %v1942_v58  ;;  %1817 = vmatprep.subr.bf16.mxu0 %v1816_v59  ;;  %v524_v51 = vld [vmem:[%s2933_s9 + $0x3a8] sm:$0xff]  ;;  %v522_v52 = vld [vmem:[%s2933_s9 + $0x398] sm:$0xff]  ;;  %v1834_v54 = vpack.c.bf16 %v515_v46, %v511_v45  ;;  %v1962_v55 = vpack.c.bf16 %v517_v49, %v513_v47  ;;  %v519_v57 = vld [vmem:[%s2933_s9 + $0x380] sm:$0xff] }
  0xed   : > { %1945 = vmatprep.subr.bf16.mxu1 %v1944_v63  ;;  %v526_v53 = vld [vmem:[%s2933_s9 + $0x3b8] sm:$0xff]  ;;  %v1836_v56 = vpack.c.bf16 %v524_v51, %v520_v50  ;;  %v523_v58 = vld [vmem:[%s2933_s9 + $0x3a0] sm:$0xff]  ;;  %v521_v59 = vld [vmem:[%s2933_s9 + $0x390] sm:$0xff] }
  0xee   : > { %v1964_v60 = vpack.c.bf16 %v526_v53, %v522_v52  ;;  %v525_v61 = vld [vmem:[%s2933_s9 + $0x3b0] sm:$0xff]  ;;  %v528_v62 = vld [vmem:[%s2933_s9 + $0x3c8] sm:$0xff]  ;;  %v530_v0 = vld [vmem:[%s2933_s9 + $0x3d8] sm:$0xff]  ;;  %v1838_v2 = vpack.c.bf16 %v523_v58, %v519_v57 }
  0xef   : > { %1819 = vmatpush1.bf16.msra.mxu0 %v1818_v5  ;;  %v532_v63 = vld [vmem:[%s2933_s9 + $0x3e8] sm:$0xff]  ;;  %v534_v1 = vld [vmem:[%s2933_s9 + $0x3f8] sm:$0xff]  ;;  %v1966_v3 = vpack.c.bf16 %v525_v61, %v521_v59  ;;  %v527_v5 = vld [vmem:[%s2933_s9 + $0x3c0] sm:$0xff] }
  0xf0   : > { %1947 = vmatpush1.bf16.msra.mxu1 %v1946_v6  ;;  %1821 = vmatprep.subr.bf16.mxu0 %v1820_v7  ;;  %v1840_v4 = vpack.c.bf16 %v532_v63, %v528_v62  ;;  %v531_v6 = vld [vmem:[%s2933_s9 + $0x3e0] sm:$0xff]  ;;  %v529_v7 = vld [vmem:[%s2933_s9 + $0x3d0] sm:$0xff]  ;;  %v1968_v8 = vpack.c.bf16 %v534_v1, %v530_v0  ;;  %v536_v10 = vld [vmem:[%s2933_s9 + $0x408] sm:$0xff] }
  0xf1   : > { %1949 = vmatprep.subr.bf16.mxu1 %v1948_v11  ;;  %v533_v9 = vld [vmem:[%s2933_s9 + $0x3f0] sm:$0xff]  ;;  %v540_v11 = vld [vmem:[%s2933_s9 + $0x428] sm:$0xff]  ;;  %v538_v12 = vld [vmem:[%s2933_s9 + $0x418] sm:$0xff]  ;;  %v1842_v14 = vpack.c.bf16 %v531_v6, %v527_v5 }
  0xf2   : > { %v542_v13 = vld [vmem:[%s2933_s9 + $0x438] sm:$0xff]  ;;  %v1970_v15 = vpack.c.bf16 %v533_v9, %v529_v7  ;;  %v1844_v16 = vpack.c.bf16 %v540_v11, %v536_v10  ;;  %v539_v18 = vld [vmem:[%s2933_s9 + $0x420] sm:$0xff]  ;;  %v541_v21 = vld [vmem:[%s2933_s9 + $0x430] sm:$0xff] }
  0xf3   : > { %1823 = vmatpush1.bf16.msra.mxu0 %v1822_v17  ;;  %v535_v17 = vld [vmem:[%s2933_s9 + $0x400] sm:$0xff]  ;;  %v544_v22 = vld [vmem:[%s2933_s9 + $0x448] sm:$0xff]  ;;  %v550_v25 = vld [vmem:[%s2933_s9 + $0x478] sm:$0xff] }
  0xf4   : > { %1951 = vmatpush1.bf16.msra.mxu1 %v1950_v19  ;;  %1825 = vmatprep.subr.bf16.mxu0 %v1824_v20  ;;  %v537_v19 = vld [vmem:[%s2933_s9 + $0x410] sm:$0xff]  ;;  %v1972_v20 = vpack.c.bf16 %v542_v13, %v538_v12  ;;  %v548_v23 = vld [vmem:[%s2933_s9 + $0x468] sm:$0xff]  ;;  %v399_v26 = vld [vmem:[#allocation3] sm:$0xff]  ;;  %v1846_v27 = vpack.c.bf16 %v539_v18, %v535_v17 }
  0xf5   : > { %1953 = vmatprep.subr.bf16.mxu1 %v1952_v24  ;;  %v546_v24 = vld [vmem:[%s2933_s9 + $0x458] sm:$0xff]  ;;  %v1974_v28 = vpack.c.bf16 %v541_v21, %v537_v19  ;;  %v1848_v29 = vpack.c.bf16 %v548_v23, %v544_v22  ;;  %v549_v34 = vld [vmem:[%s2933_s9 + $0x470] sm:$0xff]  ;;  %v552_v35 = vld [vmem:[%s2933_s9 + $0x488] sm:$0xff] }
  0xf6   : > { %v1976_v33 = vpack.c.bf16 %v550_v25, %v546_v24  ;;  %v554_v37 = vld [vmem:[%s2933_s9 + $0x498] sm:$0xff]  ;;  %v557_v46 = vld [vmem:[%s2933_s9 + $0x4b0] sm:$0xff]  ;;  %v560_v47 = vld [vmem:[%s2933_s9 + $0x4c8] sm:$0xff] }
  0xf7   : > { %1827 = vmatpush1.bf16.msra.mxu0 %v1826_v30  ;;  %v543_v30 = vld [vmem:[%s2933_s9 + $0x440] sm:$0xff]  ;;  %v558_v38 = vld [vmem:[%s2933_s9 + $0x4b8] sm:$0xff]  ;;  %v565_v58 = vld [vmem:[%s2933_s9 + $0x4f0] sm:$0xff] }
  0xf8   : > { %1955 = vmatpush1.bf16.msra.mxu1 %v1954_v31  ;;  %1829 = vmatprep.subr.bf16.mxu0 %v1828_v32  ;;  %v547_v31 = vld [vmem:[%s2933_s9 + $0x460] sm:$0xff]  ;;  %v545_v32 = vld [vmem:[%s2933_s9 + $0x450] sm:$0xff]  ;;  %v1980_v45 = vpack.c.bf16 %v558_v38, %v554_v37  ;;  %v562_v49 = vld [vmem:[%s2933_s9 + $0x4d8] sm:$0xff] }
  0xf9   : > { %1957 = vmatprep.subr.bf16.mxu1 %v1956_v36  ;;  %v556_v36 = vld [vmem:[%s2933_s9 + $0x4a8] sm:$0xff]  ;;  %v1850_v39 = vpack.c.bf16 %v547_v31, %v543_v30  ;;  %v1978_v40 = vpack.c.bf16 %v549_v34, %v545_v32  ;;  %v566_v50 = vld [vmem:[%s2933_s9 + $0x4f8] sm:$0xff]  ;;  %v573_v6 = vld [vmem:[%s2933_s9 + $0x530] sm:$0xff] }
  0xfa   : > { %v1852_v41 = vpack.c.bf16 %v556_v36, %v552_v35  ;;  %v1984_v57 = vpack.c.bf16 %v566_v50, %v562_v49  ;;  %v568_v59 = vld [vmem:[%s2933_s9 + $0x508] sm:$0xff]  ;;  %v570_v61 = vld [vmem:[%s2933_s9 + $0x518] sm:$0xff]  ;;  %v581_v18 = vld [vmem:[%s2933_s9 + $0x570] sm:$0xff] }
  0xfb   : > { %1831 = vmatpush1.bf16.msra.mxu0 %v1830_v42  ;;  %v551_v42 = vld [vmem:[%s2933_s9 + $0x480] sm:$0xff]  ;;  %v574_v62 = vld [vmem:[%s2933_s9 + $0x538] sm:$0xff]  ;;  %v576_v7 = vld [vmem:[%s2933_s9 + $0x548] sm:$0xff] }
  0xfc   : > { %1959 = vmatpush1.bf16.msra.mxu1 %v1958_v43  ;;  %1833 = vmatprep.subr.bf16.mxu0 %v1832_v44  ;;  %v555_v43 = vld [vmem:[%s2933_s9 + $0x4a0] sm:$0xff]  ;;  %v553_v44 = vld [vmem:[%s2933_s9 + $0x490] sm:$0xff]  ;;  %v1988_v5 = vpack.c.bf16 %v574_v62, %v570_v61  ;;  %v578_v9 = vld [vmem:[%s2933_s9 + $0x558] sm:$0xff] }
  0xfd   : > { %1961 = vmatprep.subr.bf16.mxu1 %v1960_v48  ;;  %v564_v48 = vld [vmem:[%s2933_s9 + $0x4e8] sm:$0xff]  ;;  %v1854_v51 = vpack.c.bf16 %v555_v43, %v551_v42  ;;  %v1982_v52 = vpack.c.bf16 %v557_v46, %v553_v44  ;;  %v582_v10 = vld [vmem:[%s2933_s9 + $0x578] sm:$0xff]  ;;  %v583_v25 = vld [vmem:[%s2933_s9 + $0x580] sm:$0xff] }
  0xfe   : > { %v1856_v53 = vpack.c.bf16 %v564_v48, %v560_v47  ;;  %v1992_v17 = vpack.c.bf16 %v582_v10, %v578_v9  ;;  %v584_v19 = vld [vmem:[%s2933_s9 + $0x588] sm:$0xff]  ;;  %v586_v21 = vld [vmem:[%s2933_s9 + $0x598] sm:$0xff]  ;;  %v585_v30 = vld [vmem:[%s2933_s9 + $0x590] sm:$0xff] }
  0xff   : > { %1835 = vmatpush1.bf16.msra.mxu0 %v1834_v54  ;;  %v559_v54 = vld [vmem:[%s2933_s9 + $0x4c0] sm:$0xff]  ;;  %v590_v22 = vld [vmem:[%s2933_s9 + $0x5b8] sm:$0xff]  ;;  %v404_v23 = vld [vmem:[#allocation3 + $0x28] sm:$0xff] }
 0x100   : > { %1963 = vmatpush1.bf16.msra.mxu1 %v1962_v55  ;;  %1837 = vmatprep.subr.bf16.mxu0 %v1836_v56  ;;  %v563_v55 = vld [vmem:[%s2933_s9 + $0x4e0] sm:$0xff]  ;;  %v561_v56 = vld [vmem:[%s2933_s9 + $0x4d0] sm:$0xff]  ;;  %v1996_v32 = vpack.c.bf16 %v590_v22, %v586_v21  ;;  %v596_v34 = vld [vmem:[%s2933_s9 + $0x5e8] sm:$0xff] }
 0x101   : > { %1965 = vmatprep.subr.bf16.mxu1 %v1964_v60  ;;  %v572_v60 = vld [vmem:[%s2933_s9 + $0x528] sm:$0xff]  ;;  %v1858_v63 = vpack.c.bf16 %v563_v55, %v559_v54  ;;  %v1986_v0 = vpack.c.bf16 %v565_v58, %v561_v56  ;;  %v589_v31 = vld [vmem:[%s2933_s9 + $0x5b0] sm:$0xff]  ;;  %v402_v35 = vld [vmem:[#allocation3 + $0x18] sm:$0xff] }
 0x102   : > { %v1860_v1 = vpack.c.bf16 %v572_v60, %v568_v59  ;;  %v594_v36 = vld [vmem:[%s2933_s9 + $0x5d8] sm:$0xff]  ;;  %v595_v42 = vld [vmem:[%s2933_s9 + $0x5e0] sm:$0xff]  ;;  %v593_v43 = vld [vmem:[%s2933_s9 + $0x5d0] sm:$0xff] }
 0x103   : > { %1839 = vmatpush1.bf16.msra.mxu0 %v1838_v2  ;;  %v567_v2 = vld [vmem:[%s2933_s9 + $0x500] sm:$0xff]  ;;  %v598_v37 = vld [vmem:[%s2933_s9 + $0x5f8] sm:$0xff]  ;;  %v600_v46 = vld [vmem:[%s2933_s9 + $0x608] sm:$0xff] }
 0x104   : > { %1967 = vmatpush1.bf16.msra.mxu1 %v1966_v3  ;;  %1841 = vmatprep.subr.bf16.mxu0 %v1840_v4  ;;  %v571_v3 = vld [vmem:[%s2933_s9 + $0x520] sm:$0xff]  ;;  %v569_v4 = vld [vmem:[%s2933_s9 + $0x510] sm:$0xff]  ;;  %v2000_v44 = vpack.c.bf16 %v598_v37, %v594_v36  ;;  %v604_v47 = vld [vmem:[%s2933_s9 + $0x628] sm:$0xff] }
 0x105   : > { %1969 = vmatprep.subr.bf16.mxu1 %v1968_v8  ;;  %v580_v8 = vld [vmem:[%s2933_s9 + $0x568] sm:$0xff]  ;;  %v1862_v11 = vpack.c.bf16 %v571_v3, %v567_v2  ;;  %v1990_v12 = vpack.c.bf16 %v573_v6, %v569_v4  ;;  %v602_v48 = vld [vmem:[%s2933_s9 + $0x618] sm:$0xff]  ;;  %v603_v54 = vld [vmem:[%s2933_s9 + $0x620] sm:$0xff] }
 0x106   : > { %v1864_v13 = vpack.c.bf16 %v580_v8, %v576_v7  ;;  %v606_v49 = vld [vmem:[%s2933_s9 + $0x638] sm:$0xff]  ;;  %v601_v55 = vld [vmem:[%s2933_s9 + $0x610] sm:$0xff]  ;;  %v608_v58 = vld [vmem:[%s2933_s9 + $0x648] sm:$0xff] }
 0x107   : > { %1843 = vmatpush1.bf16.msra.mxu0 %v1842_v14  ;;  %v575_v14 = vld [vmem:[%s2933_s9 + $0x540] sm:$0xff]  ;;  %v2004_v56 = vpack.c.bf16 %v606_v49, %v602_v48  ;;  %v612_v59 = vld [vmem:[%s2933_s9 + $0x668] sm:$0xff]  ;;  %v610_v60 = vld [vmem:[%s2933_s9 + $0x658] sm:$0xff] }
 0x108   : > { %1971 = vmatpush1.bf16.msra.mxu1 %v1970_v15  ;;  %1845 = vmatprep.subr.bf16.mxu0 %v1844_v16  ;;  %v579_v15 = vld [vmem:[%s2933_s9 + $0x560] sm:$0xff]  ;;  %v577_v16 = vld [vmem:[%s2933_s9 + $0x550] sm:$0xff]  ;;  %v614_v61 = vld [vmem:[%s2933_s9 + $0x678] sm:$0xff] }
 0x109   : > { %1973 = vmatprep.subr.bf16.mxu1 %v1972_v20  ;;  %v588_v20 = vld [vmem:[%s2933_s9 + $0x5a8] sm:$0xff]  ;;  %v1866_v24 = vpack.c.bf16 %v579_v15, %v575_v14  ;;  %v611_v2 = vld [vmem:[%s2933_s9 + $0x660] sm:$0xff]  ;;  %v609_v3 = vld [vmem:[%s2933_s9 + $0x650] sm:$0xff]  ;;  %v2008_v4 = vpack.c.bf16 %v614_v61, %v610_v60 }
 0x10a   : > { %750 = vmatmul.mubr.f32.vlgmr.msra.gmra.mrb[0].mxu0 %v399_v26  ;;  %v616_v6 = vld [vmem:[%s2933_s9 + $0x688] sm:$0xff]  ;;  %v618_v8 = vld [vmem:[%s2933_s9 + $0x698] sm:$0xff]  ;;  %v619_v14 = vld [vmem:[%s2933_s9 + $0x6a0] sm:$0xff] }
 0x10b   : > { %1847 = vmatpush1.bf16.msra.mxu0 %v1846_v27  ;;  %904 = vmatmul.mubr.f32.vlgmr.msra.gmra.mrb[0].mxu1 %v399_v26  ;;  %v403_v26 = vld [vmem:[#allocation3 + $0x20] sm:$0xff]  ;;  %v1994_v27 = vpack.c.bf16 %v581_v18, %v577_v16  ;;  %v620_v7 = vld [vmem:[%s2933_s9 + $0x6a8] sm:$0xff]  ;;  %v622_v9 = vld [vmem:[%s2933_s9 + $0x6b8] sm:$0xff] }
 0x10c   : > { %1975 = vmatpush1.bf16.msra.mxu1 %v1974_v28  ;;  %1849 = vmatprep.subr.bf16.mxu0 %v1848_v29  ;;  %v1868_v28 = vpack.c.bf16 %v588_v20, %v584_v19  ;;  %v587_v29 = vld [vmem:[%s2933_s9 + $0x5a0] sm:$0xff]  ;;  %v617_v15 = vld [vmem:[%s2933_s9 + $0x690] sm:$0xff]  ;;  %v2012_v16 = vpack.c.bf16 %v622_v9, %v618_v8  ;;  %v624_v18 = vld [vmem:[%s2933_s9 + $0x6c8] sm:$0xff] }
 0x10d   : > { %1977 = vmatprep.subr.bf16.mxu1 %v1976_v33  ;;  %755 = vmatprep.mubr.f32.mxu0 %v404_v23  ;;  %v592_v33 = vld [vmem:[%s2933_s9 + $0x5c8] sm:$0xff]  ;;  %v1870_v38 = vpack.c.bf16 %v587_v29, %v583_v25  ;;  %v626_v20 = vld [vmem:[%s2933_s9 + $0x6d8] sm:$0xff]  ;;  %v623_v25 = vld [vmem:[%s2933_s9 + $0x6c0] sm:$0xff] }
 0x10e   : > { %909 = vmatprep.mubr.f32.mxu1 %v404_v23  ;;  %756 = vmatmul.mubr.f32.gmra.mrb[2].mxu0 %v403_v26  ;;  %v628_v19 = vld [vmem:[%s2933_s9 + $0x6e8] sm:$0xff]  ;;  %v630_v21 = vld [vmem:[%s2933_s9 + $0x6f8] sm:$0xff]  ;;  %v629_v29 = vld [vmem:[%s2933_s9 + $0x6f0] sm:$0xff] }
 0x10f   : > { %1851 = vmatpush1.bf16.msra.mxu0 %v1850_v39  ;;  %910 = vmatmul.mubr.f32.gmra.mrb[2].mxu1 %v403_v26  ;;  %v1998_v39 = vpack.c.bf16 %v589_v31, %v585_v30  ;;  %v627_v26 = vld [vmem:[%s2933_s9 + $0x6e0] sm:$0xff]  ;;  %v632_v30 = vld [vmem:[%s2933_s9 + $0x708] sm:$0xff] }
 0x110   : > { %1979 = vmatpush1.bf16.msra.mxu1 %v1978_v40  ;;  %1853 = vmatprep.subr.bf16.mxu0 %v1852_v41  ;;  %v1872_v40 = vpack.c.bf16 %v596_v34, %v592_v33  ;;  %v591_v41 = vld [vmem:[%s2933_s9 + $0x5c0] sm:$0xff]  ;;  %v636_v31 = vld [vmem:[%s2933_s9 + $0x728] sm:$0xff]  ;;  %v638_v33 = vld [vmem:[%s2933_s9 + $0x738] sm:$0xff]  ;;  %v1890_v34 = vpack.c.bf16 %v627_v26, %v623_v25 }
 0x111   : > { %1981 = vmatprep.subr.bf16.mxu1 %v1980_v45  ;;  %826 = vmatprep.mubr.f32.mxu0 %v402_v35  ;;  %v597_v45 = vld [vmem:[%s2933_s9 + $0x5f0] sm:$0xff]  ;;  %v1874_v50 = vpack.c.bf16 %v595_v42, %v591_v41  ;;  %v1892_v36 = vpack.c.bf16 %v636_v31, %v632_v30  ;;  %v631_v37 = vld [vmem:[%s2933_s9 + $0x700] sm:$0xff]  ;;  %v640_v42 = vld [vmem:[%s2933_s9 + $0x748] sm:$0xff] }
 0x112   : > { %980 = vmatprep.mubr.f32.mxu1 %v402_v35  ;;  %v637_v41 = vld [vmem:[%s2933_s9 + $0x730] sm:$0xff]  ;;  %v639_v49 = vld [vmem:[%s2933_s9 + $0x740] sm:$0xff]  ;;  %v1015_v25 = vld [vmem:[%s2942_s16 + $0x30] sm:$0xff] }
 0x113   : > { %1855 = vmatpush1.bf16.msra.mxu0 %v1854_v51  ;;  %v2002_v51 = vpack.c.bf16 %v597_v45, %v593_v43  ;;  %v644_v43 = vld [vmem:[%s2933_s9 + $0x768] sm:$0xff]  ;;  %v646_v45 = vld [vmem:[%s2933_s9 + $0x778] sm:$0xff]  ;;  %v647_v61 = vld [vmem:[%s2933_s9 + $0x780] sm:$0xff] }
 0x114   : > { %1983 = vmatpush1.bf16.msra.mxu1 %v1982_v52  ;;  %1857 = vmatprep.subr.bf16.mxu0 %v1856_v53  ;;  %v1876_v52 = vpack.c.bf16 %v604_v47, %v600_v46  ;;  %v599_v53 = vld [vmem:[%s2933_s9 + $0x600] sm:$0xff]  ;;  %v1896_v48 = vpack.c.bf16 %v644_v43, %v640_v42  ;;  %v1018_v26 = vld [vmem:[%s2942_s16 + $0x48] sm:$0xff]  ;;  %v406_v31 = vld [vmem:[#allocation3 + $0x38] sm:$0xff] }
 0x115   : > { %1985 = vmatprep.subr.bf16.mxu1 %v1984_v57  ;;  %v605_v57 = vld [vmem:[%s2933_s9 + $0x630] sm:$0xff]  ;;  %v1878_v62 = vpack.c.bf16 %v603_v54, %v599_v53  ;;  %v648_v54 = vld [vmem:[%s2933_s9 + $0x788] sm:$0xff]  ;;  %v655_v9 = vld [vmem:[%s2933_s9 + $0x7c0] sm:$0xff] }
 0x116   : > { %v645_v53 = vld [vmem:[%s2933_s9 + $0x770] sm:$0xff]  ;;  %v1024_v30 = vld [vmem:[%s2942_s16 + $0x78] sm:$0xff] }
 0x117   : > { %1859 = vmatpush1.bf16.msra.mxu0 %v1858_v63  ;;  %v2006_v63 = vpack.c.bf16 %v605_v57, %v601_v55  ;;  %v652_v55 = vld [vmem:[%s2933_s9 + $0x7a8] sm:$0xff]  ;;  %v654_v57 = vld [vmem:[%s2933_s9 + $0x7b8] sm:$0xff]  ;;  %v405_v42 = vld [vmem:[#allocation3 + $0x30] sm:$0xff] }
 0x118   : > { %1987 = vmatpush1.bf16.msra.mxu1 %v1986_v0  ;;  %1861 = vmatprep.subr.bf16.mxu0 %v1860_v1  ;;  %v1880_v0 = vpack.c.bf16 %v612_v59, %v608_v58  ;;  %v607_v1 = vld [vmem:[%s2933_s9 + $0x640] sm:$0xff]  ;;  %v1900_v60 = vpack.c.bf16 %v652_v55, %v648_v54  ;;  %v1038_v54 = vld [vmem:[%s2942_s16 + $0xe8] sm:$0xff] }
 0x119   : > { %1989 = vmatprep.subr.bf16.mxu1 %v1988_v5  ;;  %v613_v5 = vld [vmem:[%s2933_s9 + $0x670] sm:$0xff]  ;;  %v1882_v10 = vpack.c.bf16 %v611_v2, %v607_v1  ;;  %v656_v2 = vld [vmem:[%s2933_s9 + $0x7c8] sm:$0xff]  ;;  %v1028_v43 = vld [vmem:[%s2942_s16 + $0x98] sm:$0xff] }
 0x11a   : > { %v653_v1 = vld [vmem:[%s2933_s9 + $0x7b0] sm:$0xff]  ;;  %v1036_v55 = vld [vmem:[%s2942_s16 + $0xd8] sm:$0xff] }
 0x11b   : > { %1863 = vmatpush1.bf16.msra.mxu0 %v1862_v11  ;;  %v2010_v11 = vpack.c.bf16 %v613_v5, %v609_v3  ;;  %v660_v3 = vld [vmem:[%s2933_s9 + $0x7e8] sm:$0xff]  ;;  %v662_v5 = vld [vmem:[%s2933_s9 + $0x7f8] sm:$0xff] }
 0x11c   : > { %1991 = vmatpush1.bf16.msra.mxu1 %v1990_v12  ;;  %1865 = vmatprep.subr.bf16.mxu0 %v1864_v13  ;;  %v1884_v12 = vpack.c.bf16 %v620_v7, %v616_v6  ;;  %v615_v13 = vld [vmem:[%s2933_s9 + $0x680] sm:$0xff]  ;;  %v1904_v8 = vpack.c.bf16 %v660_v3, %v656_v2  ;;  %v1046_v2 = vld [vmem:[%s2942_s16 + $0x128] sm:$0xff] }
 0x11d   : > { %1993 = vmatprep.subr.bf16.mxu1 %v1992_v17  ;;  %v621_v17 = vld [vmem:[%s2933_s9 + $0x6b0] sm:$0xff]  ;;  %v1886_v22 = vpack.c.bf16 %v619_v14, %v615_v13  ;;  %v1044_v3 = vld [vmem:[%s2942_s16 + $0x118] sm:$0xff] }
 0x11e   : > { %v2014_v23 = vpack.c.bf16 %v621_v17, %v617_v15  ;;  %v661_v13 = vld [vmem:[%s2933_s9 + $0x7f0] sm:$0xff]  ;;  %v1016_v17 = vld [vmem:[%s2942_s16 + $0x38] sm:$0xff] }
 0x11f   : > { %1867 = vmatpush1.bf16.msra.mxu0 %v1866_v24  ;;  %v1888_v24 = vpack.c.bf16 %v628_v19, %v624_v18  ;;  %v1010_v14 = vld [vmem:[%s2942_s16 + $0x8] sm:$0xff] }
 0x120   : > { %1995 = vmatpush1.bf16.msra.mxu1 %v1994_v27  ;;  %1869 = vmatprep.subr.bf16.mxu0 %v1868_v28  ;;  %v625_v27 = vld [vmem:[%s2933_s9 + $0x6d0] sm:$0xff]  ;;  %v2016_v28 = vpack.c.bf16 %v630_v21, %v626_v20 }
 0x121   : > { %1997 = vmatprep.subr.bf16.mxu1 %v1996_v32  ;;  %v634_v32 = vld [vmem:[%s2933_s9 + $0x718] sm:$0xff]  ;;  %v2018_v35 = vpack.c.bf16 %v629_v29, %v625_v27  ;;  %v1014_v15 = vld [vmem:[%s2942_s16 + $0x28] sm:$0xff]  ;;  %v1020_v29 = vld [vmem:[%s2942_s16 + $0x58] sm:$0xff] }
 0x122   : > { %v2036_v20 = vpack.c.bf16 %v1014_v15, %v1010_v14  ;;  %v1022_v27 = vld [vmem:[%s2942_s16 + $0x68] sm:$0xff]  ;;  %v1052_v15 = vld [vmem:[%s2942_s16 + $0x158] sm:$0xff] }
 0x123   : > { %1871 = vmatpush1.bf16.msra.mxu0 %v1870_v38  ;;  %v635_v38 = vld [vmem:[%s2933_s9 + $0x720] sm:$0xff]  ;;  %v1054_v14 = vld [vmem:[%s2942_s16 + $0x168] sm:$0xff] }
 0x124   : > { %1999 = vmatpush1.bf16.msra.mxu1 %v1998_v39  ;;  %1873 = vmatprep.subr.bf16.mxu0 %v1872_v40  ;;  %v633_v39 = vld [vmem:[%s2933_s9 + $0x710] sm:$0xff]  ;;  %v2020_v40 = vpack.c.bf16 %v638_v33, %v634_v32  ;;  %v1894_v46 = vpack.c.bf16 %v635_v38, %v631_v37  ;;  %v1019_v37 = vld [vmem:[%s2942_s16 + $0x50] sm:$0xff]  ;;  %v2168_v38 = vpack.c.bf16 %v1024_v30, %v1020_v29 }
 0x125   : > { %2001 = vmatprep.subr.bf16.mxu1 %v2000_v44  ;;  %v642_v44 = vld [vmem:[%s2933_s9 + $0x758] sm:$0xff]  ;;  %v2022_v47 = vpack.c.bf16 %v637_v41, %v633_v39  ;;  %v1030_v41 = vld [vmem:[%s2942_s16 + $0xa8] sm:$0xff] }
 0x126   : > { %v1023_v39 = vld [vmem:[%s2942_s16 + $0x70] sm:$0xff] }
 0x127   : > { %1875 = vmatpush1.bf16.msra.mxu0 %v1874_v50  ;;  %v643_v50 = vld [vmem:[%s2933_s9 + $0x760] sm:$0xff] }
 0x128   : > { %2003 = vmatpush1.bf16.msra.mxu1 %v2002_v51  ;;  %1877 = vmatprep.subr.bf16.mxu0 %v1876_v52  ;;  %v641_v51 = vld [vmem:[%s2933_s9 + $0x750] sm:$0xff]  ;;  %v2024_v52 = vpack.c.bf16 %v646_v45, %v642_v44  ;;  %v1898_v58 = vpack.c.bf16 %v643_v50, %v639_v49  ;;  %v1032_v44 = vld [vmem:[%s2942_s16 + $0xb8] sm:$0xff]  ;;  %v1029_v49 = vld [vmem:[%s2942_s16 + $0xa0] sm:$0xff] }
 0x129   : > { %2005 = vmatprep.subr.bf16.mxu1 %v2004_v56  ;;  %v650_v56 = vld [vmem:[%s2933_s9 + $0x798] sm:$0xff]  ;;  %v2026_v59 = vpack.c.bf16 %v645_v53, %v641_v51  ;;  %v2172_v51 = vpack.c.bf16 %v1032_v44, %v1028_v43  ;;  %v1034_v53 = vld [vmem:[%s2942_s16 + $0xc8] sm:$0xff]  ;;  %v1065_v44 = vld [vmem:[%s2942_s16 + $0x1c0] sm:$0xff] }
 0x12a   : > { %v1027_v50 = vld [vmem:[%s2942_s16 + $0x90] sm:$0xff] }
 0x12b   : > { %1879 = vmatpush1.bf16.msra.mxu0 %v1878_v62  ;;  %v651_v62 = vld [vmem:[%s2933_s9 + $0x7a0] sm:$0xff] }
 0x12c   : > { %2007 = vmatpush1.bf16.msra.mxu1 %v2006_v63  ;;  %1881 = vmatprep.subr.bf16.mxu0 %v1880_v0  ;;  %v649_v63 = vld [vmem:[%s2933_s9 + $0x790] sm:$0xff]  ;;  %v2028_v0 = vpack.c.bf16 %v654_v57, %v650_v56  ;;  %v1902_v6 = vpack.c.bf16 %v651_v62, %v647_v61  ;;  %v1040_v56 = vld [vmem:[%s2942_s16 + $0xf8] sm:$0xff]  ;;  %v1037_v61 = vld [vmem:[%s2942_s16 + $0xe0] sm:$0xff] }
 0x12d   : > { %2009 = vmatprep.subr.bf16.mxu1 %v2008_v4  ;;  %v658_v4 = vld [vmem:[%s2933_s9 + $0x7d8] sm:$0xff]  ;;  %v2030_v7 = vpack.c.bf16 %v653_v1, %v649_v63  ;;  %v2176_v63 = vpack.c.bf16 %v1040_v56, %v1036_v55  ;;  %v1042_v1 = vld [vmem:[%s2942_s16 + $0x108] sm:$0xff]  ;;  %v1073_v56 = vld [vmem:[%s2942_s16 + $0x200] sm:$0xff] }
 0x12e   : > { %v1035_v62 = vld [vmem:[%s2942_s16 + $0xd0] sm:$0xff] }
 0x12f   : > { %1883 = vmatpush1.bf16.msra.mxu0 %v1882_v10  ;;  %v659_v10 = vld [vmem:[%s2933_s9 + $0x7e0] sm:$0xff] }
 0x130   : > { %2011 = vmatpush1.bf16.msra.mxu1 %v2010_v11  ;;  %1885 = vmatprep.subr.bf16.mxu0 %v1884_v12  ;;  %v657_v11 = vld [vmem:[%s2933_s9 + $0x7d0] sm:$0xff]  ;;  %v2032_v12 = vpack.c.bf16 %v662_v5, %v658_v4  ;;  %v1906_v18 = vpack.c.bf16 %v659_v10, %v655_v9  ;;  %v1048_v4 = vld [vmem:[%s2942_s16 + $0x138] sm:$0xff]  ;;  %v1045_v9 = vld [vmem:[%s2942_s16 + $0x120] sm:$0xff] }
 0x131   : > { %2013 = vmatprep.subr.bf16.mxu1 %v2012_v16  ;;  %v1012_v16 = vld [vmem:[%s2942_s16 + $0x18] sm:$0xff]  ;;  %v2034_v19 = vpack.c.bf16 %v661_v13, %v657_v11  ;;  %v1043_v10 = vld [vmem:[%s2942_s16 + $0x110] sm:$0xff]  ;;  %v2180_v11 = vpack.c.bf16 %v1048_v4, %v1044_v3  ;;  %v1050_v13 = vld [vmem:[%s2942_s16 + $0x148] sm:$0xff] }
 0x132   : > { %v2164_v21 = vpack.c.bf16 %v1016_v17, %v1012_v16  ;;  %v1056_v16 = vld [vmem:[%s2942_s16 + $0x178] sm:$0xff]  ;;  %v1081_v4 = vld [vmem:[%s2942_s16 + $0x240] sm:$0xff] }
 0x133   : > { %1887 = vmatpush1.bf16.msra.mxu0 %v1886_v22  ;;  %v1009_v22 = vld [vmem:[%s2942_s16] sm:$0xff] }
 0x134   : > { %2015 = vmatpush1.bf16.msra.mxu1 %v2014_v23  ;;  %1889 = vmatprep.subr.bf16.mxu0 %v1888_v24  ;;  %v1013_v23 = vld [vmem:[%s2942_s16 + $0x20] sm:$0xff]  ;;  %v1011_v24 = vld [vmem:[%s2942_s16 + $0x10] sm:$0xff] }
 0x135   : > { %2017 = vmatprep.subr.bf16.mxu1 %v2016_v28  ;;  %v401_v28 = vld [vmem:[#allocation3 + $0x10] sm:$0xff]  ;;  %v2038_v32 = vpack.c.bf16 %v1013_v23, %v1009_v22  ;;  %v2166_v33 = vpack.c.bf16 %v1015_v25, %v1011_v24  ;;  %v1051_v22 = vld [vmem:[%s2942_s16 + $0x150] sm:$0xff]  ;;  %v2184_v23 = vpack.c.bf16 %v1056_v16, %v1052_v15  ;;  %v1089_v16 = vld [vmem:[%s2942_s16 + $0x280] sm:$0xff] }
 0x136   : > { %v1055_v24 = vld [vmem:[%s2942_s16 + $0x170] sm:$0xff]  ;;  %v1058_v25 = vld [vmem:[%s2942_s16 + $0x188] sm:$0xff] }
 0x137   : > { %1891 = vmatpush1.bf16.msra.mxu0 %v1890_v34  ;;  %v2040_v34 = vpack.c.bf16 %v1022_v27, %v1018_v26  ;;  %v1062_v26 = vld [vmem:[%s2942_s16 + $0x1a8] sm:$0xff]  ;;  %v1060_v27 = vld [vmem:[%s2942_s16 + $0x198] sm:$0xff]  ;;  %v2186_v30 = vpack.c.bf16 %v1055_v24, %v1051_v22 }
 0x138   : > { %2019 = vmatpush1.bf16.msra.mxu1 %v2018_v35  ;;  %1893 = vmatprep.subr.bf16.mxu0 %v1892_v36  ;;  %v1017_v35 = vld [vmem:[%s2942_s16 + $0x40] sm:$0xff]  ;;  %v1102_v22 = vld [vmem:[%s2942_s16 + $0x2e8] sm:$0xff]  ;;  %v1104_v24 = vld [vmem:[%s2942_s16 + $0x2f8] sm:$0xff] }
 0x139   : > { %2021 = vmatprep.subr.bf16.mxu1 %v2020_v40  ;;  %v1021_v36 = vld [vmem:[%s2942_s16 + $0x60] sm:$0xff]  ;;  %v1026_v40 = vld [vmem:[%s2942_s16 + $0x88] sm:$0xff] }
 0x13a   : > { %v2042_v45 = vpack.c.bf16 %v1021_v36, %v1017_v35  ;;  %v1063_v36 = vld [vmem:[%s2942_s16 + $0x1b0] sm:$0xff] }
 0x13b   : > { %1895 = vmatpush1.bf16.msra.mxu0 %v1894_v46  ;;  %v2170_v46 = vpack.c.bf16 %v1023_v39, %v1019_v37  ;;  %v1066_v37 = vld [vmem:[%s2942_s16 + $0x1c8] sm:$0xff]  ;;  %v1068_v39 = vld [vmem:[%s2942_s16 + $0x1d8] sm:$0xff] }
 0x13c   : > { %2023 = vmatpush1.bf16.msra.mxu1 %v2022_v47  ;;  %1897 = vmatprep.subr.bf16.mxu0 %v1896_v48  ;;  %v2044_v47 = vpack.c.bf16 %v1030_v41, %v1026_v40  ;;  %v1025_v48 = vld [vmem:[%s2942_s16 + $0x80] sm:$0xff]  ;;  %v1072_v40 = vld [vmem:[%s2942_s16 + $0x1f8] sm:$0xff] }
 0x13d   : > { %2025 = vmatprep.subr.bf16.mxu1 %v2024_v52  ;;  %v1031_v52 = vld [vmem:[%s2942_s16 + $0xb0] sm:$0xff]  ;;  %v2046_v57 = vpack.c.bf16 %v1029_v49, %v1025_v48  ;;  %v1074_v49 = vld [vmem:[%s2942_s16 + $0x208] sm:$0xff] }
 0x13e   : > { %v1071_v48 = vld [vmem:[%s2942_s16 + $0x1f0] sm:$0xff] }
 0x13f   : > { %1899 = vmatpush1.bf16.msra.mxu0 %v1898_v58  ;;  %v2174_v58 = vpack.c.bf16 %v1031_v52, %v1027_v50  ;;  %v1078_v50 = vld [vmem:[%s2942_s16 + $0x228] sm:$0xff]  ;;  %v1080_v52 = vld [vmem:[%s2942_s16 + $0x238] sm:$0xff] }
 0x140   : > { %2027 = vmatpush1.bf16.msra.mxu1 %v2026_v59  ;;  %1901 = vmatprep.subr.bf16.mxu0 %v1900_v60  ;;  %v2048_v59 = vpack.c.bf16 %v1038_v54, %v1034_v53  ;;  %v1033_v60 = vld [vmem:[%s2942_s16 + $0xc0] sm:$0xff]  ;;  %v2068_v55 = vpack.c.bf16 %v1078_v50, %v1074_v49 }
 0x141   : > { %2029 = vmatprep.subr.bf16.mxu1 %v2028_v0  ;;  %v1039_v0 = vld [vmem:[%s2942_s16 + $0xf0] sm:$0xff]  ;;  %v2050_v5 = vpack.c.bf16 %v1037_v61, %v1033_v60  ;;  %v1082_v61 = vld [vmem:[%s2942_s16 + $0x248] sm:$0xff] }
 0x142   : > { %v1079_v60 = vld [vmem:[%s2942_s16 + $0x230] sm:$0xff] }
 0x143   : > { %1903 = vmatpush1.bf16.msra.mxu0 %v1902_v6  ;;  %v2178_v6 = vpack.c.bf16 %v1039_v0, %v1035_v62  ;;  %v1086_v62 = vld [vmem:[%s2942_s16 + $0x268] sm:$0xff]  ;;  %v1088_v0 = vld [vmem:[%s2942_s16 + $0x278] sm:$0xff] }
 0x144   : > { %2031 = vmatpush1.bf16.msra.mxu1 %v2030_v7  ;;  %1905 = vmatprep.subr.bf16.mxu0 %v1904_v8  ;;  %v2052_v7 = vpack.c.bf16 %v1046_v2, %v1042_v1  ;;  %v1041_v8 = vld [vmem:[%s2942_s16 + $0x100] sm:$0xff]  ;;  %v2072_v3 = vpack.c.bf16 %v1086_v62, %v1082_v61 }
 0x145   : > { %2033 = vmatprep.subr.bf16.mxu1 %v2032_v12  ;;  %v1047_v12 = vld [vmem:[%s2942_s16 + $0x130] sm:$0xff]  ;;  %v2054_v17 = vpack.c.bf16 %v1045_v9, %v1041_v8  ;;  %v1090_v9 = vld [vmem:[%s2942_s16 + $0x288] sm:$0xff] }
 0x146   : > { %v1087_v8 = vld [vmem:[%s2942_s16 + $0x270] sm:$0xff] }
 0x147   : > { %1907 = vmatpush1.bf16.msra.mxu0 %v1906_v18  ;;  %v2182_v18 = vpack.c.bf16 %v1047_v12, %v1043_v10  ;;  %v1094_v10 = vld [vmem:[%s2942_s16 + $0x2a8] sm:$0xff]  ;;  %v1096_v12 = vld [vmem:[%s2942_s16 + $0x2b8] sm:$0xff] }
 0x148   : > { %2035 = vmatpush1.bf16.msra.mxu1 %v2034_v19  ;;  %2037 = vmatprep.subr.bf16.mxu0 %v2036_v20  ;;  %v2056_v19 = vpack.c.bf16 %v1054_v14, %v1050_v13  ;;  %v1049_v20 = vld [vmem:[%s2942_s16 + $0x140] sm:$0xff]  ;;  %v2076_v15 = vpack.c.bf16 %v1094_v10, %v1090_v9  ;;  %v1132_v9 = vld [vmem:[%s2942_s16 + $0x3d8] sm:$0xff] }
 0x149   : > { %2165 = vmatprep.subr.bf16.mxu1 %v2164_v21  ;;  %v1053_v21 = vld [vmem:[%s2942_s16 + $0x160] sm:$0xff] }
 0x14a   : > { %827 = vmatmul.mubr.f32.vlgmr.msra.gmra.mrb[0].mxu0 %v401_v28  ;;  %v2058_v29 = vpack.c.bf16 %v1053_v21, %v1049_v20  ;;  %v1095_v20 = vld [vmem:[%s2942_s16 + $0x2b0] sm:$0xff]  ;;  %v1098_v21 = vld [vmem:[%s2942_s16 + $0x2c8] sm:$0xff] }
 0x14b   : > { %981 = vmatmul.mubr.f32.vlgmr.msra.gmra.mrb[0].mxu1 %v401_v28  ;;  %832 = vmatprep.mubr.f32.mxu0 %v406_v31  ;;  %v1064_v28 = vld [vmem:[%s2942_s16 + $0x1b8] sm:$0xff] }
 0x14c   : > { %986 = vmatprep.mubr.f32.mxu1 %v406_v31  ;;  %2039 = vmatpush1.bf16.msra.mxu0 %v2038_v32  ;;  %v2060_v31 = vpack.c.bf16 %v1062_v26, %v1058_v25  ;;  %v1057_v32 = vld [vmem:[%s2942_s16 + $0x180] sm:$0xff]  ;;  %v2188_v35 = vpack.c.bf16 %v1064_v28, %v1060_v27  ;;  %v2080_v27 = vpack.c.bf16 %v1102_v22, %v1098_v21  ;;  %v1140_v21 = vld [vmem:[%s2942_s16 + $0x418] sm:$0xff] }
 0x14d   : > { %2167 = vmatpush1.bf16.msra.mxu1 %v2166_v33  ;;  %2041 = vmatprep.subr.bf16.mxu0 %v2040_v34  ;;  %v1061_v33 = vld [vmem:[%s2942_s16 + $0x1a0] sm:$0xff]  ;;  %v1059_v34 = vld [vmem:[%s2942_s16 + $0x190] sm:$0xff] }
 0x14e   : > { %833 = vmatmul.mubr.f32.gmra.mrb[2].mxu0 %v405_v42  ;;  %2169 = vmatprep.subr.bf16.mxu1 %v2168_v38  ;;  %v1070_v38 = vld [vmem:[%s2942_s16 + $0x1e8] sm:$0xff]  ;;  %v2062_v41 = vpack.c.bf16 %v1061_v33, %v1057_v32  ;;  %v1097_v28 = vld [vmem:[%s2942_s16 + $0x2c0] sm:$0xff]  ;;  %v1103_v32 = vld [vmem:[%s2942_s16 + $0x2f0] sm:$0xff] }
 0x14f   : > { %987 = vmatmul.mubr.f32.gmra.mrb[2].mxu1 %v405_v42  ;;  %v2190_v42 = vpack.c.bf16 %v1063_v36, %v1059_v34  ;;  %v2064_v43 = vpack.c.bf16 %v1070_v38, %v1066_v37  ;;  %v1106_v33 = vld [vmem:[%s2942_s16 + $0x308] sm:$0xff]  ;;  %v1112_v36 = vld [vmem:[%s2942_s16 + $0x338] sm:$0xff] }
 0x150   : > { %2043 = vmatpush1.bf16.msra.mxu0 %v2042_v45  ;;  %v1069_v45 = vld [vmem:[%s2942_s16 + $0x1e0] sm:$0xff]  ;;  %v1110_v34 = vld [vmem:[%s2942_s16 + $0x328] sm:$0xff] }
 0x151   : > { %2171 = vmatpush1.bf16.msra.mxu1 %v2170_v46  ;;  %2045 = vmatprep.subr.bf16.mxu0 %v2044_v47  ;;  %v1067_v46 = vld [vmem:[%s2942_s16 + $0x1d0] sm:$0xff]  ;;  %v2192_v47 = vpack.c.bf16 %v1072_v40, %v1068_v39  ;;  %v2066_v53 = vpack.c.bf16 %v1069_v45, %v1065_v44  ;;  %v2084_v39 = vpack.c.bf16 %v1110_v34, %v1106_v33  ;;  %v1105_v40 = vld [vmem:[%s2942_s16 + $0x300] sm:$0xff]  ;;  %v1114_v45 = vld [vmem:[%s2942_s16 + $0x348] sm:$0xff] }
 0x152   : > { %2173 = vmatprep.subr.bf16.mxu1 %v2172_v51  ;;  %v1076_v51 = vld [vmem:[%s2942_s16 + $0x218] sm:$0xff]  ;;  %v2194_v54 = vpack.c.bf16 %v1071_v48, %v1067_v46  ;;  %v1111_v44 = vld [vmem:[%s2942_s16 + $0x330] sm:$0xff]  ;;  %v1118_v46 = vld [vmem:[%s2942_s16 + $0x368] sm:$0xff] }
 0x153   : > { %v1120_v48 = vld [vmem:[%s2942_s16 + $0x378] sm:$0xff]  ;;  %v1137_v34 = vld [vmem:[%s2942_s16 + $0x400] sm:$0xff] }
 0x154   : > { %2047 = vmatpush1.bf16.msra.mxu0 %v2046_v57  ;;  %v1077_v57 = vld [vmem:[%s2942_s16 + $0x220] sm:$0xff] }
 0x155   : > { %2175 = vmatpush1.bf16.msra.mxu1 %v2174_v58  ;;  %2049 = vmatprep.subr.bf16.mxu0 %v2048_v59  ;;  %v1075_v58 = vld [vmem:[%s2942_s16 + $0x210] sm:$0xff]  ;;  %v2196_v59 = vpack.c.bf16 %v1080_v52, %v1076_v51  ;;  %v2070_v1 = vpack.c.bf16 %v1077_v57, %v1073_v56  ;;  %v2088_v51 = vpack.c.bf16 %v1118_v46, %v1114_v45  ;;  %v1113_v52 = vld [vmem:[%s2942_s16 + $0x340] sm:$0xff]  ;;  %v1122_v57 = vld [vmem:[%s2942_s16 + $0x388] sm:$0xff] }
 0x156   : > { %2177 = vmatprep.subr.bf16.mxu1 %v2176_v63  ;;  %v1084_v63 = vld [vmem:[%s2942_s16 + $0x258] sm:$0xff]  ;;  %v2198_v2 = vpack.c.bf16 %v1079_v60, %v1075_v58  ;;  %v1119_v56 = vld [vmem:[%s2942_s16 + $0x370] sm:$0xff]  ;;  %v1126_v58 = vld [vmem:[%s2942_s16 + $0x3a8] sm:$0xff] }
 0x157   : > { %v1128_v60 = vld [vmem:[%s2942_s16 + $0x3b8] sm:$0xff] }
 0x158   : > { %2051 = vmatpush1.bf16.msra.mxu0 %v2050_v5  ;;  %v1085_v5 = vld [vmem:[%s2942_s16 + $0x260] sm:$0xff]  ;;  %v1148_v45 = vld [vmem:[%s2942_s16 + $0x458] sm:$0xff] }
 0x159   : > { %2179 = vmatpush1.bf16.msra.mxu1 %v2178_v6  ;;  %2053 = vmatprep.subr.bf16.mxu0 %v2052_v7  ;;  %v1083_v6 = vld [vmem:[%s2942_s16 + $0x250] sm:$0xff]  ;;  %v2200_v7 = vpack.c.bf16 %v1088_v0, %v1084_v63  ;;  %v2074_v13 = vpack.c.bf16 %v1085_v5, %v1081_v4  ;;  %v2092_v63 = vpack.c.bf16 %v1126_v58, %v1122_v57  ;;  %v1121_v0 = vld [vmem:[%s2942_s16 + $0x380] sm:$0xff]  ;;  %v1152_v46 = vld [vmem:[%s2942_s16 + $0x478] sm:$0xff] }
 0x15a   : > { %2181 = vmatprep.subr.bf16.mxu1 %v2180_v11  ;;  %v1092_v11 = vld [vmem:[%s2942_s16 + $0x298] sm:$0xff]  ;;  %v2202_v14 = vpack.c.bf16 %v1087_v8, %v1083_v6  ;;  %v1127_v4 = vld [vmem:[%s2942_s16 + $0x3b0] sm:$0xff]  ;;  %v1134_v8 = vld [vmem:[%s2942_s16 + $0x3e8] sm:$0xff]  ;;  %v2232_v57 = vpack.c.bf16 %v1152_v46, %v1148_v45 }
 0x15b   : > { %v1149_v58 = vld [vmem:[%s2942_s16 + $0x460] sm:$0xff]  ;;  %v1180_v45 = vld [vmem:[%s2942_s16 + $0x558] sm:$0xff] }
 0x15c   : > { %2055 = vmatpush1.bf16.msra.mxu0 %v2054_v17  ;;  %v1093_v17 = vld [vmem:[%s2942_s16 + $0x2a0] sm:$0xff]  ;;  %v1184_v46 = vld [vmem:[%s2942_s16 + $0x578] sm:$0xff] }
 0x15d   : > { %2183 = vmatpush1.bf16.msra.mxu1 %v2182_v18  ;;  %2057 = vmatprep.subr.bf16.mxu0 %v2056_v19  ;;  %v1091_v18 = vld [vmem:[%s2942_s16 + $0x290] sm:$0xff]  ;;  %v2204_v19 = vpack.c.bf16 %v1096_v12, %v1092_v11  ;;  %v2078_v25 = vpack.c.bf16 %v1093_v17, %v1089_v16  ;;  %v1136_v11 = vld [vmem:[%s2942_s16 + $0x3f8] sm:$0xff]  ;;  %v1129_v12 = vld [vmem:[%s2942_s16 + $0x3c0] sm:$0xff] }
 0x15e   : > { %2185 = vmatprep.subr.bf16.mxu1 %v2184_v23  ;;  %v1100_v23 = vld [vmem:[%s2942_s16 + $0x2d8] sm:$0xff]  ;;  %v2206_v26 = vpack.c.bf16 %v1095_v20, %v1091_v18  ;;  %v1131_v16 = vld [vmem:[%s2942_s16 + $0x3d0] sm:$0xff]  ;;  %v1142_v20 = vld [vmem:[%s2942_s16 + $0x428] sm:$0xff] }
 0x15f   : > { %v1135_v17 = vld [vmem:[%s2942_s16 + $0x3f0] sm:$0xff] }
 0x160   : > { %2059 = vmatpush1.bf16.msra.mxu0 %v2058_v29  ;;  %v1101_v29 = vld [vmem:[%s2942_s16 + $0x2e0] sm:$0xff]  ;;  %v2226_v18 = vpack.c.bf16 %v1135_v17, %v1131_v16  ;;  %v1166_v16 = vld [vmem:[%s2942_s16 + $0x4e8] sm:$0xff]  ;;  %v1164_v17 = vld [vmem:[%s2942_s16 + $0x4d8] sm:$0xff] }
 0x161   : > { %2187 = vmatpush1.bf16.msra.mxu1 %v2186_v30  ;;  %2061 = vmatprep.subr.bf16.mxu0 %v2060_v31  ;;  %v1099_v30 = vld [vmem:[%s2942_s16 + $0x2d0] sm:$0xff]  ;;  %v2208_v31 = vpack.c.bf16 %v1104_v24, %v1100_v23  ;;  %v2082_v37 = vpack.c.bf16 %v1101_v29, %v1097_v28  ;;  %v1144_v23 = vld [vmem:[%s2942_s16 + $0x438] sm:$0xff] }
 0x162   : > { %2189 = vmatprep.subr.bf16.mxu1 %v2188_v35  ;;  %v1108_v35 = vld [vmem:[%s2942_s16 + $0x318] sm:$0xff]  ;;  %v2210_v38 = vpack.c.bf16 %v1103_v32, %v1099_v30  ;;  %v2228_v24 = vpack.c.bf16 %v1144_v23, %v1140_v21  ;;  %v1165_v23 = vld [vmem:[%s2942_s16 + $0x4e0] sm:$0xff] }
 0x163   : > { %v3346_v28 = vld [vmem:[%s315_s29] sm:$0xf] }
 0x164   : > { %2063 = vmatpush1.bf16.msra.mxu0 %v2062_v41  ;;  %v1109_v41 = vld [vmem:[%s2942_s16 + $0x320] sm:$0xff] }
 0x165   : > { %2191 = vmatpush1.bf16.msra.mxu1 %v2190_v42  ;;  %2065 = vmatprep.subr.bf16.mxu0 %v2064_v43  ;;  %v1107_v42 = vld [vmem:[%s2942_s16 + $0x310] sm:$0xff]  ;;  %v2212_v43 = vpack.c.bf16 %v1112_v36, %v1108_v35  ;;  %v2086_v49 = vpack.c.bf16 %v1109_v41, %v1105_v40  ;;  %v1141_v35 = vld [vmem:[%s2942_s16 + $0x420] sm:$0xff]  ;;  %v1146_v41 = vld [vmem:[%s2942_s16 + $0x448] sm:$0xff] }
 0x166   : > { %2193 = vmatprep.subr.bf16.mxu1 %v2192_v47  ;;  %v1116_v47 = vld [vmem:[%s2942_s16 + $0x358] sm:$0xff]  ;;  %v2214_v50 = vpack.c.bf16 %v1111_v44, %v1107_v42  ;;  %v1143_v40 = vld [vmem:[%s2942_s16 + $0x430] sm:$0xff]  ;;  %v1150_v44 = vld [vmem:[%s2942_s16 + $0x468] sm:$0xff] }
 0x168   : > { %2067 = vmatpush1.bf16.msra.mxu0 %v2066_v53  ;;  %v1117_v53 = vld [vmem:[%s2942_s16 + $0x360] sm:$0xff] }
 0x169   : > { %2195 = vmatpush1.bf16.msra.mxu1 %v2194_v54  ;;  %2069 = vmatprep.subr.bf16.mxu0 %v2068_v55  ;;  %v1115_v54 = vld [vmem:[%s2942_s16 + $0x350] sm:$0xff]  ;;  %v2216_v55 = vpack.c.bf16 %v1120_v48, %v1116_v47  ;;  %v2090_v61 = vpack.c.bf16 %v1117_v53, %v1113_v52  ;;  %v1145_v52 = vld [vmem:[%s2942_s16 + $0x440] sm:$0xff] }
 0x16a   : > { %2197 = vmatprep.subr.bf16.mxu1 %v2196_v59  ;;  %v1124_v59 = vld [vmem:[%s2942_s16 + $0x398] sm:$0xff]  ;;  %v2218_v62 = vpack.c.bf16 %v1119_v56, %v1115_v54  ;;  %v2104_v56 = vpack.c.bf16 %v1150_v44, %v1146_v41  ;;  %v1171_v41 = vld [vmem:[%s2942_s16 + $0x510] sm:$0xff]  ;;  %v1182_v44 = vld [vmem:[%s2942_s16 + $0x568] sm:$0xff] }
 0x16c   : > { %2071 = vmatpush1.bf16.msra.mxu0 %v2070_v1  ;;  %v1125_v1 = vld [vmem:[%s2942_s16 + $0x3a0] sm:$0xff] }
 0x16d   : > { %2199 = vmatpush1.bf16.msra.mxu1 %v2198_v2  ;;  %2073 = vmatprep.subr.bf16.mxu0 %v2072_v3  ;;  %v2220_v2 = vpack.c.bf16 %v1128_v60, %v1124_v59  ;;  %v1123_v3 = vld [vmem:[%s2942_s16 + $0x390] sm:$0xff]  ;;  %v2094_v5 = vpack.c.bf16 %v1125_v1, %v1121_v0 }
 0x16e   : > { %2201 = vmatprep.subr.bf16.mxu1 %v2200_v7  ;;  %v2222_v6 = vpack.c.bf16 %v1127_v4, %v1123_v3  ;;  %v1130_v7 = vld [vmem:[%s2942_s16 + $0x3c8] sm:$0xff]  ;;  %v1147_v59 = vld [vmem:[%s2942_s16 + $0x450] sm:$0xff]  ;;  %v1156_v3 = vld [vmem:[%s2942_s16 + $0x498] sm:$0xff] }
 0x16f   : > { %v2096_v10 = vpack.c.bf16 %v1134_v8, %v1130_v7  ;;  %v1151_v60 = vld [vmem:[%s2942_s16 + $0x470] sm:$0xff]  ;;  %v1160_v4 = vld [vmem:[%s2942_s16 + $0x4b8] sm:$0xff]  ;;  %v1153_v8 = vld [vmem:[%s2942_s16 + $0x480] sm:$0xff] }
 0x170   : > { %2075 = vmatpush1.bf16.msra.mxu0 %v2074_v13  ;;  %v1133_v13 = vld [vmem:[%s2942_s16 + $0x3e0] sm:$0xff]  ;;  %v2234_v7 = vpack.c.bf16 %v1151_v60, %v1147_v59  ;;  %v1192_v59 = vld [vmem:[%s2942_s16 + $0x5b8] sm:$0xff] }
 0x171   : > { %2203 = vmatpush1.bf16.msra.mxu1 %v2202_v14  ;;  %2077 = vmatprep.subr.bf16.mxu0 %v2076_v15  ;;  %v2224_v14 = vpack.c.bf16 %v1136_v11, %v1132_v9  ;;  %v2098_v15 = vpack.c.bf16 %v1133_v13, %v1129_v12  ;;  %v1157_v9 = vld [vmem:[%s2942_s16 + $0x4a0] sm:$0xff]  ;;  %v1155_v11 = vld [vmem:[%s2942_s16 + $0x490] sm:$0xff]  ;;  %v1162_v13 = vld [vmem:[%s2942_s16 + $0x4c8] sm:$0xff] }
 0x172   : > { %2205 = vmatprep.subr.bf16.mxu1 %v2204_v19  ;;  %v1138_v19 = vld [vmem:[%s2942_s16 + $0x408] sm:$0xff]  ;;  %v1159_v12 = vld [vmem:[%s2942_s16 + $0x4b0] sm:$0xff] }
 0x173   : > { %v2100_v22 = vpack.c.bf16 %v1142_v20, %v1138_v19  ;;  %v2110_v20 = vpack.c.bf16 %v1157_v9, %v1153_v8  ;;  %v2238_v21 = vpack.c.bf16 %v1159_v12, %v1155_v11  ;;  %v1196_v8 = vld [vmem:[%s2942_s16 + $0x5d8] sm:$0xff]  ;;  %v1193_v12 = vld [vmem:[%s2942_s16 + $0x5c0] sm:$0xff] }
 0x174   : > { %2079 = vmatpush1.bf16.msra.mxu0 %v2078_v25  ;;  %v665_v25 = vlaneseq  ;;  %v1200_v9 = vld [vmem:[%s2942_s16 + $0x5f8] sm:$0xff] }
 0x175   : > { %2207 = vmatpush1.bf16.msra.mxu1 %v2206_v26  ;;  %2081 = vmatprep.subr.bf16.mxu0 %v2080_v27 }
 0x176   : > { %2209 = vmatprep.subr.bf16.mxu1 %v2208_v31  ;;  %v3341_v26 = vshrl.u32 %v665_v25, 7 }
 0x178   : > { %2083 = vmatpush1.bf16.msra.mxu0 %v2082_v37  ;;  %v667_v27 = vsub.s32 0, %v3341_v26  ;;  %v671_v29 = vsub.s32 1, %v3341_v26  ;;  %v679_v32 = vsub.s32 3, %v3341_v26 }
 0x179   : > { %2211 = vmatpush1.bf16.msra.mxu1 %v2210_v38  ;;  %2085 = vmatprep.subr.bf16.mxu0 %v2084_v39  ;;  %v1139_v39 = vld [vmem:[%s2942_s16 + $0x410] sm:$0xff] }
 0x17a   : > { %2213 = vmatprep.subr.bf16.mxu1 %v2212_v43  ;;  %v668_v30 = vrot.slane %v3346_v28, %v667_v27  ;;  %v672_v31 = vrot.slane %v3346_v28, %v671_v29  ;;  %v3363_v47 = vrot.slane %v3346_v28, %v679_v32  ;;  %v1163_v27 = vld [vmem:[%s2942_s16 + $0x4d0] sm:$0xff]  ;;  %v1172_v32 = vld [vmem:[%s2942_s16 + $0x518] sm:$0xff] }
 0x17b   : > { %v1167_v29 = vld [vmem:[%s2942_s16 + $0x4f0] sm:$0xff] }
 0x17c   : > { %2087 = vmatpush1.bf16.msra.mxu0 %v2086_v49 }
 0x17d   : > { %2215 = vmatpush1.bf16.msra.mxu1 %v2214_v50  ;;  %2089 = vmatprep.subr.bf16.mxu0 %v2088_v51  ;;  %v2102_v50 = vpack.c.bf16 %v1141_v35, %v1137_v34  ;;  %v2230_v51 = vpack.c.bf16 %v1143_v40, %v1139_v39  ;;  %v2242_v35 = vpack.c.bf16 %v1167_v29, %v1163_v27 }
 0x17e   : > { %2217 = vmatprep.subr.bf16.mxu1 %v2216_v55 }
 0x180   : > { %2091 = vmatpush1.bf16.msra.mxu0 %v2090_v61 }
 0x181   : > { %2219 = vmatpush1.bf16.msra.mxu1 %v2218_v62  ;;  %2093 = vmatprep.subr.bf16.mxu0 %v2092_v63  ;;  %v1154_v63 = vld [vmem:[%s2942_s16 + $0x488] sm:$0xff] }
 0x182   : > { %2221 = vmatprep.subr.bf16.mxu1 %v2220_v2  ;;  %v1158_v2 = vld [vmem:[%s2942_s16 + $0x4a8] sm:$0xff] }
 0x184   : > { %2095 = vmatpush1.bf16.msra.mxu0 %v2094_v5 }
 0x185   : > { %2223 = vmatpush1.bf16.msra.mxu1 %v2222_v6  ;;  %2097 = vmatprep.subr.bf16.mxu0 %v2096_v10  ;;  %v2106_v6 = vpack.c.bf16 %v1149_v58, %v1145_v52  ;;  %v1188_v58 = vld [vmem:[%s2942_s16 + $0x598] sm:$0xff] }
 0x186   : > { %2225 = vmatprep.subr.bf16.mxu1 %v2224_v14  ;;  %v2108_v14 = vpack.c.bf16 %v1158_v2, %v1154_v63  ;;  %v1185_v63 = vld [vmem:[%s2942_s16 + $0x580] sm:$0xff] }
 0x188   : > { %2099 = vmatpush1.bf16.msra.mxu0 %v2098_v15  ;;  %v2236_v15 = vpack.c.bf16 %v1160_v4, %v1156_v3  ;;  %v2252_v3 = vpack.c.bf16 %v1192_v59, %v1188_v58  ;;  %v1187_v4 = vld [vmem:[%s2942_s16 + $0x590] sm:$0xff]  ;;  %v1226_v58 = vld [vmem:[%s2942_s16 + $0x6c8] sm:$0xff] }
 0x189   : > { %2227 = vmatpush1.bf16.msra.mxu1 %v2226_v18  ;;  %2101 = vmatprep.subr.bf16.mxu0 %v2100_v22  ;;  %v1168_v18 = vld [vmem:[%s2942_s16 + $0x4f8] sm:$0xff]  ;;  %v1161_v22 = vld [vmem:[%s2942_s16 + $0x4c0] sm:$0xff]  ;;  %v1230_v59 = vld [vmem:[%s2942_s16 + $0x6e8] sm:$0xff] }
 0x18a   : > { %2229 = vmatprep.subr.bf16.mxu1 %v2228_v24  ;;  %v2112_v24 = vpack.c.bf16 %v1166_v16, %v1162_v13  ;;  %v2240_v25 = vpack.c.bf16 %v1168_v18, %v1164_v17  ;;  %v2114_v34 = vpack.c.bf16 %v1165_v23, %v1161_v22  ;;  %v1197_v13 = vld [vmem:[%s2942_s16 + $0x5e0] sm:$0xff]  ;;  %v1195_v16 = vld [vmem:[%s2942_s16 + $0x5d0] sm:$0xff]  ;;  %v1202_v18 = vld [vmem:[%s2942_s16 + $0x608] sm:$0xff] }
 0x18b   : > { %v1199_v17 = vld [vmem:[%s2942_s16 + $0x5f0] sm:$0xff]  ;;  %v2130_v22 = vpack.c.bf16 %v1197_v13, %v1193_v12 }
 0x18c   : > { %v2258_v23 = vpack.c.bf16 %v1199_v17, %v1195_v16 }
 0x21d   : > { %v828_v33 = vpop.f32.mrb[0].mxu0 }
 0x21e   : > { %v2292_v36 = vadd.f32 %v828_v33, %v668_v30  ;;  %v3354_v37 = vpop.f32.mrb[0].mxu1  ;;  %v830_v38 = vpop.f32.mrb[1].mxu0  ;;  %v1176_v33 = vld [vmem:[%s2942_s16 + $0x538] sm:$0xff] }
 0x21f   : > { %v2293_v42 = vadd.f32 %v830_v38, %v672_v31  ;;  %v984_v43 = vpop.f32.mrb[1].mxu1  ;;  %v1173_v38 = vld [vmem:[%s2942_s16 + $0x520] sm:$0xff]  ;;  %v2244_v40 = vpack.c.bf16 %v1176_v33, %v1172_v32  ;;  %v1210_v32 = vld [vmem:[%s2942_s16 + $0x648] sm:$0xff] }
 0x220   : > { %v993_v53 = vmax.f32 %v2292_v36, 0.0  ;;  %v2297_v1 = vadd.f32 %v984_v43, %v3363_v47  ;;  %v1169_v36 = vld [vmem:[%s2942_s16 + $0x500] sm:$0xff]  ;;  %v1178_v43 = vld [vmem:[%s2942_s16 + $0x548] sm:$0xff] }
 0x221   : > { %v994_v48 = vmax.f32 %v2293_v42, 0.0  ;;  %v834_v49 = vpop.f32.mrb[2].mxu0  ;;  %v1175_v42 = vld [vmem:[%s2942_s16 + $0x530] sm:$0xff]  ;;  %v2120_v52 = vpack.c.bf16 %v1182_v44, %v1178_v43  ;;  %v1214_v33 = vld [vmem:[%s2942_s16 + $0x668] sm:$0xff] }
 0x222   : > { %v2294_v54 = vadd.f32 %v834_v49, %v668_v30  ;;  %v836_v55 = vpop.f32.mrb[3].mxu0  ;;  %v3369_v61 = vpop.f32.mrb[2].mxu1  ;;  %v996_v19 = vmax.f32 %v2297_v1, 0.0  ;;  %v1170_v30 = vld [vmem:[%s2942_s16 + $0x508] sm:$0xff]  ;;  %v2246_v49 = vpack.c.bf16 %v1175_v42, %v1171_v41  ;;  %v1189_v1 = vld [vmem:[%s2942_s16 + $0x5a0] sm:$0xff]  ;;  %v2136_v41 = vpack.c.bf16 %v1214_v33, %v1210_v32  ;;  %v1211_v43 = vld [vmem:[%s2942_s16 + $0x650] sm:$0xff] }
 0x223   : > { %v2295_v62 = vadd.f32 %v836_v55, %v672_v31  ;;  %1329 = vmatprep.mubr.f32.mxu0 %v994_v48  ;;  %1483 = vmatprep.mubr.f32.mxu1 %v994_v48  ;;  %v3372_v0 = vpop.f32.mrb[3].mxu1  ;;  %v1174_v31 = vld [vmem:[%s2942_s16 + $0x528] sm:$0xff]  ;;  %v2118_v48 = vpack.c.bf16 %v1173_v38, %v1169_v36  ;;  %v1183_v55 = vld [vmem:[%s2942_s16 + $0x570] sm:$0xff] }
 0x224   : > { %1330 = vmatmul.mubr.f32.vlgmr.msra.gmra.mrb[4].mxu0 %v993_v53  ;;  %1484 = vmatmul.mubr.f32.vlgmr.msra.gmra.mrb[4].mxu1 %v993_v53  ;;  %v997_v10 = vmax.f32 %v2294_v54, 0.0  ;;  %v2116_v39 = vpack.c.bf16 %v1174_v31, %v1170_v30  ;;  %v2248_v53 = vpack.c.bf16 %v1184_v46, %v1180_v45  ;;  %v1179_v54 = vld [vmem:[%s2942_s16 + $0x550] sm:$0xff]  ;;  %v1218_v45 = vld [vmem:[%s2942_s16 + $0x688] sm:$0xff] }
 0x225   : > { %v998_v5 = vmax.f32 %v2295_v62, 0.0  ;;  %2103 = vmatpush1.bf16.msra.mxu0 %v2102_v50  ;;  %2231 = vmatpush1.bf16.msra.mxu1 %v2230_v51  ;;  %v1177_v50 = vld [vmem:[%s2942_s16 + $0x540] sm:$0xff]  ;;  %v2250_v62 = vpack.c.bf16 %v1183_v55, %v1179_v54  ;;  %v1203_v30 = vld [vmem:[%s2942_s16 + $0x610] sm:$0xff]  ;;  %v1222_v46 = vld [vmem:[%s2942_s16 + $0x6a8] sm:$0xff] }
 0x226   : > { %2105 = vmatprep.subr.bf16.mxu0 %v2104_v56  ;;  %2233 = vmatprep.subr.bf16.mxu1 %v2232_v57  ;;  %v1181_v51 = vld [vmem:[%s2942_s16 + $0x560] sm:$0xff]  ;;  %v1186_v56 = vld [vmem:[%s2942_s16 + $0x588] sm:$0xff]  ;;  %v1207_v31 = vld [vmem:[%s2942_s16 + $0x630] sm:$0xff]  ;;  %v2140_v54 = vpack.c.bf16 %v1222_v46, %v1218_v45 }
 0x227   : > { %1335 = vmatprep.mubr.f32.mxu0 %v998_v5  ;;  %1489 = vmatprep.mubr.f32.mxu1 %v998_v5  ;;  %v1190_v57 = vld [vmem:[%s2942_s16 + $0x5a8] sm:$0xff]  ;;  %v2122_v60 = vpack.c.bf16 %v1181_v51, %v1177_v50  ;;  %v1191_v5 = vld [vmem:[%s2942_s16 + $0x5b0] sm:$0xff]  ;;  %v2262_v38 = vpack.c.bf16 %v1207_v31, %v1203_v30 }
 0x228   : > { %1336 = vmatmul.mubr.f32.gmra.mrb[6].mxu0 %v997_v10  ;;  %1490 = vmatmul.mubr.f32.gmra.mrb[6].mxu1 %v997_v10  ;;  %v2124_v2 = vpack.c.bf16 %v1190_v57, %v1186_v56  ;;  %v2126_v10 = vpack.c.bf16 %v1189_v1, %v1185_v63  ;;  %v2254_v11 = vpack.c.bf16 %v1191_v5, %v1187_v4  ;;  %v1215_v44 = vld [vmem:[%s2942_s16 + $0x670] sm:$0xff] }
 0x229   : > { %2107 = vmatpush1.bf16.msra.mxu0 %v2106_v6  ;;  %2235 = vmatpush1.bf16.msra.mxu1 %v2234_v7  ;;  %v1194_v6 = vld [vmem:[%s2942_s16 + $0x5c8] sm:$0xff]  ;;  %v2266_v51 = vpack.c.bf16 %v1215_v44, %v1211_v43  ;;  %v1219_v56 = vld [vmem:[%s2942_s16 + $0x690] sm:$0xff]  ;;  %v2144_v4 = vpack.c.bf16 %v1230_v59, %v1226_v58  ;;  %v675_v43 = vsub.s32 2, %v3341_v26  ;;  %v1261_v58 = vld [vmem:[%s2942_s16 + $0x7e0] sm:$0xff] }
 0x22a   : > { %1406 = vmatprep.mubr.f32.mxu0 %v996_v19  ;;  %1560 = vmatprep.mubr.f32.mxu1 %v996_v19  ;;  %v1198_v7 = vld [vmem:[%s2942_s16 + $0x5e8] sm:$0xff]  ;;  %v1223_v57 = vld [vmem:[%s2942_s16 + $0x6b0] sm:$0xff] }
 0x22b   : > { %2109 = vmatprep.subr.bf16.mxu0 %v2108_v14  ;;  %2237 = vmatprep.subr.bf16.mxu1 %v2236_v15  ;;  %v2128_v14 = vpack.c.bf16 %v1198_v7, %v1194_v6  ;;  %v2256_v15 = vpack.c.bf16 %v1200_v9, %v1196_v8  ;;  %v1206_v19 = vld [vmem:[%s2942_s16 + $0x628] sm:$0xff]  ;;  %v2270_v1 = vpack.c.bf16 %v1223_v57, %v1219_v56  ;;  %v1227_v6 = vld [vmem:[%s2942_s16 + $0x6d0] sm:$0xff] }
 0x22c   : > { %v2132_v27 = vpack.c.bf16 %v1206_v19, %v1202_v18  ;;  %v1231_v7 = vld [vmem:[%s2942_s16 + $0x6f0] sm:$0xff]  ;;  %v1234_v8 = vld [vmem:[%s2942_s16 + $0x708] sm:$0xff]  ;;  %v676_v26 = vrot.slane %v3346_v28, %v675_v43 }
 0x22d   : > { %2111 = vmatpush1.bf16.msra.mxu0 %v2110_v20  ;;  %2239 = vmatpush1.bf16.msra.mxu1 %v2238_v21  ;;  %v1204_v20 = vld [vmem:[%s2942_s16 + $0x618] sm:$0xff]  ;;  %v1238_v9 = vld [vmem:[%s2942_s16 + $0x728] sm:$0xff]  ;;  %v2274_v13 = vpack.c.bf16 %v1231_v7, %v1227_v6  ;;  %v1235_v18 = vld [vmem:[%s2942_s16 + $0x710] sm:$0xff] }
 0x22e   : > { %2113 = vmatprep.subr.bf16.mxu0 %v2112_v24  ;;  %2241 = vmatprep.subr.bf16.mxu1 %v2240_v25  ;;  %v1208_v21 = vld [vmem:[%s2942_s16 + $0x638] sm:$0xff]  ;;  %v1201_v24 = vld [vmem:[%s2942_s16 + $0x600] sm:$0xff]  ;;  %v2148_v16 = vpack.c.bf16 %v1238_v9, %v1234_v8  ;;  %v1239_v19 = vld [vmem:[%s2942_s16 + $0x730] sm:$0xff] }
 0x22f   : > { %v1205_v25 = vld [vmem:[%s2942_s16 + $0x620] sm:$0xff]  ;;  %v2260_v29 = vpack.c.bf16 %v1208_v21, %v1204_v20  ;;  %v1242_v20 = vld [vmem:[%s2942_s16 + $0x748] sm:$0xff]  ;;  %v1243_v32 = vld [vmem:[%s2942_s16 + $0x750] sm:$0xff] }
 0x230   : > { %v2134_v36 = vpack.c.bf16 %v1205_v25, %v1201_v24  ;;  %v1246_v21 = vld [vmem:[%s2942_s16 + $0x768] sm:$0xff]  ;;  %v2278_v25 = vpack.c.bf16 %v1239_v19, %v1235_v18  ;;  %v1247_v33 = vld [vmem:[%s2942_s16 + $0x770] sm:$0xff]  ;;  %v1001_v6 = vld [vmem:[#allocation2] sm:$0xff] }
 0x231   : > { %2115 = vmatpush1.bf16.msra.mxu0 %v2114_v34  ;;  %2243 = vmatpush1.bf16.msra.mxu1 %v2242_v35  ;;  %v1212_v34 = vld [vmem:[%s2942_s16 + $0x658] sm:$0xff]  ;;  %v2152_v30 = vpack.c.bf16 %v1246_v21, %v1242_v20  ;;  %v1251_v46 = vld [vmem:[%s2942_s16 + $0x790] sm:$0xff]  ;;  %v1002_v7 = vld [vmem:[#allocation2 + $0x8] sm:$0xff] }
 0x232   : > { %2117 = vmatprep.subr.bf16.mxu0 %v2116_v39  ;;  %2245 = vmatprep.subr.bf16.mxu1 %v2244_v40  ;;  %v1216_v35 = vld [vmem:[%s2942_s16 + $0x678] sm:$0xff]  ;;  %v1209_v39 = vld [vmem:[%s2942_s16 + $0x640] sm:$0xff]  ;;  %v1259_v59 = vld [vmem:[%s2942_s16 + $0x7d0] sm:$0xff] }
 0x233   : > { %v1213_v40 = vld [vmem:[%s2942_s16 + $0x660] sm:$0xff]  ;;  %v2264_v42 = vpack.c.bf16 %v1216_v35, %v1212_v34  ;;  %v1250_v34 = vld [vmem:[%s2942_s16 + $0x788] sm:$0xff]  ;;  %v1004_v8 = vld [vmem:[#allocation2 + $0x18] sm:$0xff] }
 0x234   : > { %v2138_v50 = vpack.c.bf16 %v1213_v40, %v1209_v39  ;;  %v1254_v35 = vld [vmem:[%s2942_s16 + $0x7a8] sm:$0xff]  ;;  %v2282_v40 = vpack.c.bf16 %v1247_v33, %v1243_v32 }
 0x235   : > { %2119 = vmatpush1.bf16.msra.mxu0 %v2118_v48  ;;  %2247 = vmatpush1.bf16.msra.mxu1 %v2246_v49  ;;  %v1220_v48 = vld [vmem:[%s2942_s16 + $0x698] sm:$0xff]  ;;  %v2156_v44 = vpack.c.bf16 %v1254_v35, %v1250_v34 }
 0x236   : > { %2121 = vmatprep.subr.bf16.mxu0 %v2120_v52  ;;  %2249 = vmatprep.subr.bf16.mxu1 %v2248_v53  ;;  %v1224_v49 = vld [vmem:[%s2942_s16 + $0x6b8] sm:$0xff]  ;;  %v1217_v52 = vld [vmem:[%s2942_s16 + $0x680] sm:$0xff] }
 0x237   : > { %v1221_v53 = vld [vmem:[%s2942_s16 + $0x6a0] sm:$0xff]  ;;  %v2268_v55 = vpack.c.bf16 %v1224_v49, %v1220_v48  ;;  %v1255_v48 = vld [vmem:[%s2942_s16 + $0x7b0] sm:$0xff]  ;;  %v1258_v49 = vld [vmem:[%s2942_s16 + $0x7c8] sm:$0xff] }
 0x238   : > { %v2142_v63 = vpack.c.bf16 %v1221_v53, %v1217_v52  ;;  %v1264_v52 = vld [vmem:[%s2942_s16 + $0x7f8] sm:$0xff] }
 0x239   : > { %2123 = vmatpush1.bf16.msra.mxu0 %v2122_v60  ;;  %2251 = vmatpush1.bf16.msra.mxu1 %v2250_v62  ;;  %v1228_v60 = vld [vmem:[%s2942_s16 + $0x6d8] sm:$0xff] }
 0x23a   : > { %2125 = vmatprep.subr.bf16.mxu0 %v2124_v2  ;;  %2253 = vmatprep.subr.bf16.mxu1 %v2252_v3  ;;  %v1232_v62 = vld [vmem:[%s2942_s16 + $0x6f8] sm:$0xff]  ;;  %v1225_v2 = vld [vmem:[%s2942_s16 + $0x6c0] sm:$0xff] }
 0x23b   : > { %v1229_v3 = vld [vmem:[%s2942_s16 + $0x6e0] sm:$0xff]  ;;  %v2272_v5 = vpack.c.bf16 %v1232_v62, %v1228_v60  ;;  %v1263_v60 = vld [vmem:[%s2942_s16 + $0x7f0] sm:$0xff] }
 0x23c   : > { %v2146_v12 = vpack.c.bf16 %v1229_v3, %v1225_v2  ;;  %v2299_v2 = vadd.f32 %v3372_v0, %v3363_v47  ;;  %v2298_v3 = vadd.f32 %v3369_v61, %v676_v26 }
 0x23d   : > { %2127 = vmatpush1.bf16.msra.mxu0 %v2126_v10  ;;  %2255 = vmatpush1.bf16.msra.mxu1 %v2254_v11  ;;  %v1236_v10 = vld [vmem:[%s2942_s16 + $0x718] sm:$0xff] }
 0x23e   : > { %2129 = vmatprep.subr.bf16.mxu0 %v2128_v14  ;;  %2257 = vmatprep.subr.bf16.mxu1 %v2256_v15  ;;  %v1240_v11 = vld [vmem:[%s2942_s16 + $0x738] sm:$0xff]  ;;  %v1233_v14 = vld [vmem:[%s2942_s16 + $0x700] sm:$0xff] }
 0x23f   : > { %v1237_v15 = vld [vmem:[%s2942_s16 + $0x720] sm:$0xff]  ;;  %v2276_v17 = vpack.c.bf16 %v1240_v11, %v1236_v10 }
 0x240   : > { %v2150_v24 = vpack.c.bf16 %v1237_v15, %v1233_v14  ;;  %v1005_v14 = vld [vmem:[#allocation2 + $0x20] sm:$0xff]  ;;  %v1007_v15 = vld [vmem:[#allocation2 + $0x30] sm:$0xff] }
 0x241   : > { %2131 = vmatpush1.bf16.msra.mxu0 %v2130_v22  ;;  %2259 = vmatpush1.bf16.msra.mxu1 %v2258_v23  ;;  %v1244_v22 = vld [vmem:[%s2942_s16 + $0x758] sm:$0xff] }
 0x242   : > { %2133 = vmatprep.subr.bf16.mxu0 %v2132_v27  ;;  %2261 = vmatprep.subr.bf16.mxu1 %v2260_v29  ;;  %v1248_v23 = vld [vmem:[%s2942_s16 + $0x778] sm:$0xff]  ;;  %v1241_v27 = vld [vmem:[%s2942_s16 + $0x740] sm:$0xff] }
 0x243   : > { %v1245_v29 = vld [vmem:[%s2942_s16 + $0x760] sm:$0xff]  ;;  %v2280_v31 = vpack.c.bf16 %v1248_v23, %v1244_v22 }
 0x244   : > { %v2154_v39 = vpack.c.bf16 %v1245_v29, %v1241_v27 }
 0x245   : > { %2135 = vmatpush1.bf16.msra.mxu0 %v2134_v36  ;;  %2263 = vmatpush1.bf16.msra.mxu1 %v2262_v38  ;;  %v1252_v36 = vld [vmem:[%s2942_s16 + $0x798] sm:$0xff] }
 0x246   : > { %2137 = vmatprep.subr.bf16.mxu0 %v2136_v41  ;;  %2265 = vmatprep.subr.bf16.mxu1 %v2264_v42  ;;  %v1256_v38 = vld [vmem:[%s2942_s16 + $0x7b8] sm:$0xff]  ;;  %v1249_v41 = vld [vmem:[%s2942_s16 + $0x780] sm:$0xff] }
 0x247   : > { %v1253_v42 = vld [vmem:[%s2942_s16 + $0x7a0] sm:$0xff]  ;;  %v2284_v45 = vpack.c.bf16 %v1256_v38, %v1252_v36 }
 0x248   : > { %v2158_v53 = vpack.c.bf16 %v1253_v42, %v1249_v41 }
 0x249   : > { %2139 = vmatpush1.bf16.msra.mxu0 %v2138_v50  ;;  %2267 = vmatpush1.bf16.msra.mxu1 %v2266_v51  ;;  %v1262_v50 = vld [vmem:[%s2942_s16 + $0x7e8] sm:$0xff]  ;;  %v1260_v51 = vld [vmem:[%s2942_s16 + $0x7d8] sm:$0xff] }
 0x24a   : > { %2141 = vmatprep.subr.bf16.mxu0 %v2140_v54  ;;  %2269 = vmatprep.subr.bf16.mxu1 %v2268_v55  ;;  %v2286_v54 = vpack.c.bf16 %v1255_v48, %v1251_v46  ;;  %v1257_v55 = vld [vmem:[%s2942_s16 + $0x7c0] sm:$0xff]  ;;  %v2160_v56 = vpack.c.bf16 %v1262_v50, %v1258_v49  ;;  %v2288_v57 = vpack.c.bf16 %v1264_v52, %v1260_v51 }
 0x24b   : > { %v2162_v62 = vpack.c.bf16 %v1261_v58, %v1257_v55 }
 0x24d   : > { %2143 = vmatpush1.bf16.msra.mxu0 %v2142_v63  ;;  %2271 = vmatpush1.bf16.msra.mxu1 %v2270_v1  ;;  %v2290_v63 = vpack.c.bf16 %v1263_v60, %v1259_v59  ;;  %v2296_v1 = vadd.f32 %v3354_v37, %v676_v26  ;;  %v1003_v37 = vld [vmem:[#allocation2 + $0x10] sm:$0xff] }
 0x24e   : > { %2145 = vmatprep.subr.bf16.mxu0 %v2144_v4  ;;  %2273 = vmatprep.subr.bf16.mxu1 %v2272_v5  ;;  %v1000_v4 = vmax.f32 %v2299_v2, 0.0  ;;  %v999_v5 = vmax.f32 %v2298_v3, 0.0 }
 0x24f   : > { %v995_v28 = vmax.f32 %v2296_v1, 0.0 }
 0x251   : > { %2147 = vmatpush1.bf16.msra.mxu0 %v2146_v12  ;;  %2275 = vmatpush1.bf16.msra.mxu1 %v2274_v13 }
 0x252   : > { %2149 = vmatprep.subr.bf16.mxu0 %v2148_v16  ;;  %2277 = vmatprep.subr.bf16.mxu1 %v2276_v17  ;;  %v1006_v16 = vld [vmem:[#allocation2 + $0x28] sm:$0xff]  ;;  %v1008_v17 = vld [vmem:[#allocation2 + $0x38] sm:$0xff] }
 0x255   : > { %2151 = vmatpush1.bf16.msra.mxu0 %v2150_v24  ;;  %2279 = vmatpush1.bf16.msra.mxu1 %v2278_v25 }
 0x256   : > { %2153 = vmatprep.subr.bf16.mxu0 %v2152_v30  ;;  %2281 = vmatprep.subr.bf16.mxu1 %v2280_v31 }
 0x259   : > { %2155 = vmatpush1.bf16.msra.mxu0 %v2154_v39  ;;  %2283 = vmatpush1.bf16.msra.mxu1 %v2282_v40 }
 0x25a   : > { %2157 = vmatprep.subr.bf16.mxu0 %v2156_v44  ;;  %2285 = vmatprep.subr.bf16.mxu1 %v2284_v45 }
 0x25d   : > { %2159 = vmatpush1.bf16.msra.mxu0 %v2158_v53  ;;  %2287 = vmatpush1.bf16.msra.mxu1 %v2286_v54 }
 0x25e   : > { %2161 = vmatprep.subr.bf16.mxu0 %v2160_v56  ;;  %2289 = vmatprep.subr.bf16.mxu1 %v2288_v57 }
 0x261   : > { %2163 = vmatpush1.bf16.msra.mxu0 %v2162_v62  ;;  %2291 = vmatpush1.bf16.msra.mxu1 %v2290_v63 }
 0x264   : > { %1407 = vmatmul.mubr.f32.vlgmr.msra.gmra.mrb[4].mxu0 %v995_v28  ;;  %1561 = vmatmul.mubr.f32.vlgmr.msra.gmra.mrb[4].mxu1 %v995_v28 }
 0x265   : > { %1412 = vmatprep.mubr.f32.mxu0 %v1000_v4  ;;  %1566 = vmatprep.mubr.f32.mxu1 %v1000_v4 }
 0x268   : > { %1413 = vmatmul.mubr.f32.gmra.mrb[6].mxu0 %v999_v5  ;;  %1567 = vmatmul.mubr.f32.gmra.mrb[6].mxu1 %v999_v5 }
 0x337   : > { %v1408_v9 = vpop.f32.mrb[4].mxu0  ;;  %v1562_v10 = vpop.f32.mrb[4].mxu1 }
 0x338   : > { %v1573_v47 = vadd.f32 %v1408_v9, %v1001_v6  ;;  %v1575_v0 = vadd.f32 %v1562_v10, %v1003_v37  ;;  %v1410_v11 = vpop.f32.mrb[5].mxu0  ;;  %v1564_v12 = vpop.f32.mrb[5].mxu1 }
 0x339   : > { %v1574_v13 = vadd.f32 %v1410_v11, %v1002_v7  ;;  %v1576_v61 = vadd.f32 %v1564_v12, %v1004_v8  ;;  %1592 = sbr.rel (%p1771_p12) target bundleno = 840 (0x348), region = 68 }
 0x33a   : > { %1581 = vst [vmem:[#allocation2] sm:$0xff] %v1573_v47  ;;  %1583 = vst [vmem:[#allocation2 + $0x10] sm:$0xff] %v1575_v0 }
 0x33b   : > { %1582 = vst [vmem:[#allocation2 + $0x8] sm:$0xff] %v1574_v13  ;;  %1584 = vst [vmem:[#allocation2 + $0x18] sm:$0xff] %v1576_v61  ;;  %v1414_v18 = vpop.f32.mrb[6].mxu0  ;;  %v1568_v19 = vpop.f32.mrb[6].mxu1 }
 0x33c   : > { %v1577_v20 = vadd.f32 %v1414_v18, %v1005_v14  ;;  %v1579_v21 = vadd.f32 %v1568_v19, %v1007_v15  ;;  %v1416_v22 = vpop.f32.mrb[7].mxu0  ;;  %v1570_v23 = vpop.f32.mrb[7].mxu1 }
 0x33d   : > { %v1578_v24 = vadd.f32 %v1416_v22, %v1006_v16  ;;  %v1580_v25 = vadd.f32 %v1570_v23, %v1008_v17 }
 0x33e   : > { %1585 = vst [vmem:[#allocation2 + $0x20] sm:$0xff] %v1577_v20  ;;  %1587 = vst [vmem:[#allocation2 + $0x30] sm:$0xff] %v1579_v21 }
 0x33f   : > { %1586 = vst [vmem:[#allocation2 + $0x28] sm:$0xff] %v1578_v24  ;;  %1588 = vst [vmem:[#allocation2 + $0x38] sm:$0xff] %v1580_v25 }
 0x341   : > { %v1593_v27 = vld [vmem:[#allocation2] sm:$0xff]  ;;  %v1595_v30 = vld [vmem:[#allocation2 + $0x10] sm:$0xff] }
 0x342   : > { %v1594_v29 = vld [vmem:[#allocation2 + $0x8] sm:$0xff]  ;;  %1601 = vst [vmem:[#allocation12] sm:$0xff] %v1593_v27  ;;  %1603 = vst [vmem:[#allocation12 + $0x10] sm:$0xff] %v1595_v30  ;;  %v1596_v31 = vld [vmem:[#allocation2 + $0x18] sm:$0xff] }
 0x343   : > { %1602 = vst [vmem:[#allocation12 + $0x8] sm:$0xff] %v1594_v29  ;;  %1604 = vst [vmem:[#allocation12 + $0x18] sm:$0xff] %v1596_v31 }
 0x345   : > { %v1597_v32 = vld [vmem:[#allocation2 + $0x20] sm:$0xff]  ;;  %v1599_v34 = vld [vmem:[#allocation2 + $0x30] sm:$0xff] }
 0x346   : > { %v1598_v33 = vld [vmem:[#allocation2 + $0x28] sm:$0xff]  ;;  %1605 = vst [vmem:[#allocation12 + $0x20] sm:$0xff] %v1597_v32  ;;  %v1600_v35 = vld [vmem:[#allocation2 + $0x38] sm:$0xff]  ;;  %1607 = vst [vmem:[#allocation12 + $0x30] sm:$0xff] %v1599_v34 }
 0x347   : > { %1606 = vst [vmem:[#allocation12 + $0x28] sm:$0xff] %v1598_v33  ;;  %1608 = vst [vmem:[#allocation12 + $0x38] sm:$0xff] %v1600_v35 }
 0x348 PF: > { %p2356_p11 = scmp.eq.s32.totalorder %s2724_s24, 3  ;;  %s2662_s18 = smov [#allocation12]  }
 0x349   : > { %s1619_s25 = sshll.u32 %s2662_s18, 4  ;;  %s1620_s25 = int_to_ptr.vmem [resolvable:$true] %s1619_s25 }
 0x34a   : > { %s2560_s11 = scalar_lea.vmem %s1620_s25, 1024  ;;  %p2567_p6 = scmp.lt.s32.totalorder %s1620_s25, %s1620_s25 }
 0x34b   : > { %p2561_p0 = scmp.ne.s32.totalorder %s1620_s25, %s2560_s11  ;;  %p2568_p8 = scmp.lt.s32.totalorder %s2560_s11, %s2560_s11 }
 0x34d   : > { %p2562_p7 = pnand %p2561_p0, %p2356_p11  ;;  %p2569_p13 = por %p2568_p8, %p2567_p6 }
 0x34f   : > { %p2563_p10 = pneg %p2562_p7 }
 0x351   : > { %p2570_p3 = pnand %p2569_p13, %p2563_p10 }
 0x353   : > { %2573 = shalt.err (!%p2570_p3)
}
 0x354   : > { %s3583_s14 = sld [smem:[#allocation23_spill]] }
 0x35a   : > { %s2574_s10 = scalar_lea.hbm %s3583_s14, 1024 }
 0x35b   : > { %p2575_p1 = scmp.ne.s32.totalorder %s3583_s14, %s2574_s10  ;;  %p2580_p5 = scmp.lt.u32.totalorder %s2574_s10, %s3583_s14 }
 0x35d   : > { %p2576_p4 = pnand %p2575_p1, %p2356_p11 }
 0x35f   : > { %p2577_p9 = pneg %p2576_p4 }
 0x361   : > { %p2582_p2 = pnand %p2580_p5, %p2577_p9 }
 0x363   : > { %2585 = shalt.err (!%p2582_p2)
}
 0x364   : > { %s2663_s21 = smov 512   ;;  %s2664_s6 = smov 32  }
 0x365   : > { %2331 = dma.vmem_to_hbm [thread:$0]  (%p2356_p11), %s1620_s25, 1024, %s3583_s14, [#allocation5], %s2663_s21, %s2663_s21, %s2664_s6  }
 0x366   : > { %2627 = dma.done.wait (%p2356_p11), [#allocation5], 1024  }
 0x367   : > { %2629 = vsyncadd (%p2356_p11), [#allocation5], 4294966272 }
 0x368 PF: > { %s23_s23 = sadd.s32 1, %s2652_s23   ;;  %s3584_s30 = sld [smem:[#allocation20_spill]] }
 0x369   : > { %p20_p12 = scmp.ge.s32.totalorder %s23_s23, 6   ;;  %s3585_s9 = sld [smem:[#allocation19_spill]] }
 0x36a   : > { %s3586_s18 = smov %s2636_s19  ;;  %s3587_s19 = smov %s2640_s20 }
 0x36b   : > { %s3589_s21 = smov %s2648_s22  ;;  %22 = sbr.rel (!%p20_p12) target bundleno = 12 (0xc), region = 120 }
 0x36e   : > { %s3588_s20 = smov %s3584_s30 }
 0x36f   : > { %s3590_s22 = smov %s3585_s9 }
 0x372   :  { %1635 = vsyncpa [#allocation4], 1 }
 0x373   :  { %1637 = vsyncpa [#allocation4 + $0x1], 1 }
 0x374   :  { %1638 = vsyncpa [#allocation7], 1 }
 0x375   :  { %1640 = vsyncpa [#allocation7 + $0x1], 1 }
 0x376   :  { %1641 = vsyncpa [#allocation10], 1 }
 0x377   :  { %1643 = vsyncpa [#allocation10 + $0x1], 1 }
 0x378   :  { %1644 = vsyncpa [#allocation5], 1 }
 0x379   :  { %1646 = vsyncpa [#allocation5 + $0x1], 1 }

</bundles_post_ra>
